<compile_context>
chip_gen: v6e
topology: v6e:2x2x1
jax: 0.10.0
libtpu: 0.0.40
codegen_flags: <defaults>
</compile_context>

<pallas_src>
import numpy as np
import jax
import jax.numpy as jnp
from jax.experimental import pallas as pl
from jax.experimental.pallas import tpu as pltpu


# ------------------------- one-time parameter prep ------------------------- #

def prepare_params(params, compute_dtype=jnp.float32):
    """Build stacked conv-as-matmul / FC matrices (all permutations hoisted)."""
    w1, b1, w2, b2, fw1, fb1, fw2, fb2 = [np.asarray(p, np.float32) for p in params]

    # conv1 (1->10, k=5): one [140, 256] matrix.  Rows = (kh, w_in); columns
    # 0..127 = even W-pool phase, 128..255 = odd phase; within a phase the
    # column is j*10 + cout (j = pooled-W index 0..11), zero-padded to 128.
    W1 = np.zeros((5 * 28, 256), np.float32)
    for kh in range(5):
        for kw in range(5):
            for j in range(12):
                W1[kh * 28 + 2 * j + kw, j * 10:(j + 1) * 10] = w1[:, 0, kh, kw]
                W1[kh * 28 + 2 * j + 1 + kw, 128 + j * 10:128 + (j + 1) * 10] = w1[:, 0, kh, kw]
    b1v = np.zeros((1, 128), np.float32)
    b1v[0, :120] = np.tile(b1, 12)

    # conv2 (10->20, k=5): one [640, 256] matrix.  Rows = (kh, j*10 + cin)
    # with conv1's 128-padded lane layout; columns 0..127 even / 128..255 odd
    # W-pool phase, within a phase column = jp*20 + cout (jp = 0..3).
    W2 = np.zeros((5 * 128, 256), np.float32)
    for kh in range(5):
        for kw in range(5):
            blk = w2[:, :, kh, kw].T                     # [cin=10, cout=20]
            for jp in range(4):
                je = 2 * jp + kw
                jo = 2 * jp + 1 + kw
                W2[kh * 128 + je * 10: kh * 128 + (je + 1) * 10, jp * 20:(jp + 1) * 20] = blk
                W2[kh * 128 + jo * 10: kh * 128 + (jo + 1) * 10, 128 + jp * 20:128 + (jp + 1) * 20] = blk
    b2v = np.zeros((1, 128), np.float32)
    b2v[0, :80] = np.tile(b2, 4)

    # fc1: one [512, 128] matrix.  Input lanes = 128-aligned ip blocks with
    # lane jp*20 + cout inside each block; torch's NCHW x.view(-1, 320) order
    # (flat = cout*16 + ip*4 + jp) is folded in; outputs padded 50 -> 128.
    F1 = np.zeros((4 * 128, 128), np.float32)
    for ip in range(4):
        for jp in range(4):
            for cout in range(20):
                F1[ip * 128 + jp * 20 + cout, :50] = fw1[:, cout * 16 + ip * 4 + jp]
    fb1v = np.zeros((1, 128), np.float32)
    fb1v[0, :50] = fb1

    # fc2: [128, 128] (outputs padded 10 -> 128 for a lane-dense HBM write).
    F2 = np.zeros((128, 128), np.float32)
    F2[:50, :10] = fw2.T
    fb2v = np.zeros((1, 128), np.float32)
    fb2v[0, :10] = fb2

    cast = lambda a: jnp.asarray(a, compute_dtype)
    return (cast(W1), jnp.asarray(b1v), cast(W2), jnp.asarray(b2v),
            cast(F1), jnp.asarray(fb1v), cast(F2), jnp.asarray(fb2v))


# ------------------------------ fused kernel ------------------------------- #

def _simple_cnn_kernel(x_ref, w1_ref, b1_ref, w2_ref, b2_ref,
                       f1_ref, fb1_ref, f2_ref, fb2_ref, o_ref):
    f32 = jnp.float32
    TB = x_ref.shape[1]                                  # batch tile (mult of 8)

    # ---- conv1: 5 kh taps folded into K=140, even/odd W-phases in N=256 ----
    x = x_ref[...]                                       # (28, TB, 28), rows = H
    lhs1 = jnp.concatenate([x[kh:kh + 24] for kh in range(5)], axis=-1)
    lhs1 = lhs1.reshape(24 * TB, 5 * 28).astype(w1_ref.dtype)
    acc1 = jnp.dot(lhs1, w1_ref[...], preferred_element_type=f32)   # (24*TB, 256)
    # W-pool = max of the two 128-lane phases; + bias + ReLU.
    p1 = jnp.maximum(jnp.maximum(acc1[:, :128], acc1[:, 128:]) + b1_ref[...], 0.0)
    # H-pool: max over adjacent H slabs along the leading dim (no gathers).
    r1 = p1.reshape(12, 2, TB, 128)
    pooled1 = jnp.maximum(r1[:, 0], r1[:, 1])            # (12, TB, 128)

    # ---- conv2 (conv2_drop = identity in eval): K=5*128, 128-aligned concat -
    lhs2 = jnp.concatenate([pooled1[kh:kh + 8] for kh in range(5)], axis=-1)
    lhs2 = lhs2.reshape(8 * TB, 5 * 128).astype(w2_ref.dtype)
    acc2 = jnp.dot(lhs2, w2_ref[...], preferred_element_type=f32)   # (8*TB, 256)
    p2 = jnp.maximum(jnp.maximum(acc2[:, :128], acc2[:, 128:]) + b2_ref[...], 0.0)
    r2 = p2.reshape(4, 2, TB, 128)
    pooled2 = jnp.maximum(r2[:, 0], r2[:, 1])            # (4, TB, 128)

    # ---- flatten (128-aligned lane concat) + fc1 + ReLU + fc2 --------------
    fc_in = jnp.concatenate([pooled2[ip] for ip in range(4)], axis=-1)  # (TB, 512)
    h = jnp.dot(fc_in.astype(f1_ref.dtype), f1_ref[...], preferred_element_type=f32)
    h = jnp.maximum(h + fb1_ref[...], 0.0)               # (TB, 128); F.dropout eval = id
    out = jnp.dot(h.astype(f2_ref.dtype), f2_ref[...], preferred_element_type=f32)
    o_ref[...] = (out + fb2_ref[...]).astype(o_ref.dtype)


# ------------------------------ forward pass ------------------------------- #

def _round_up(n, m):
    return ((n + m - 1) // m) * m


def _rep_spec(shape):
    nd = len(shape)
    return pl.BlockSpec(shape, lambda i, _nd=nd: (0,) * _nd)


def simple_cnn_forward(x_nchw, prepared, batch_tile=64):
    """SimpleCNN.forward (eval-mode dropout).  x_nchw: [B, 1, 28, 28]."""
    W1, b1v, W2, b2v, F1, fb1v, F2, fb2v = prepared
    B = x_nchw.shape[0]
    assert x_nchw.shape[1:] == (1, 28, 28)
    assert batch_tile % 8 == 0

    # Batch tile: multiple of 8 for clean sublane layout.  For real batches
    # pick batch_tile so Bp // TB >= 2 (both v7x TensorCores busy).
    TB = min(batch_tile, _round_up(B, 8))
    Bp = _round_up(B, TB)

    x = x_nchw.reshape(B, 28, 28).astype(W1.dtype)
    if Bp != B:
        x = jnp.pad(x, ((0, Bp - B), (0, 0), (0, 0)))
    x = jnp.transpose(x, (1, 0, 2))                      # (28, Bp, 28): H-major rows

    out = pl.pallas_call(
        _simple_cnn_kernel,
        out_shape=jax.ShapeDtypeStruct((Bp, 128), jnp.float32),
        grid=(Bp // TB,),
        in_specs=[
            pl.BlockSpec((28, TB, 28), lambda i: (0, i, 0)),
            _rep_spec(W1.shape), _rep_spec(b1v.shape),
            _rep_spec(W2.shape), _rep_spec(b2v.shape),
            _rep_spec(F1.shape), _rep_spec(fb1v.shape),
            _rep_spec(F2.shape), _rep_spec(fb2v.shape),
        ],
        out_specs=pl.BlockSpec((TB, 128), lambda i: (i, 0)),
        compiler_params=pltpu.CompilerParams(
            dimension_semantics=("parallel",),
            vmem_limit_bytes=32 * 1024 * 1024),
    )(x, W1, b1v, W2, b2v, F1, fb1v, F2, fb2v)
    return out[:B, :10]


# --------------------------- pure-JAX reference ---------------------------- #

def _ref_forward(x, params):
    w1, b1, w2, b2, fw1, fb1, fw2, fb2 = params
    dn = ("NCHW", "OIHW", "NCHW")
    y = jax.lax.conv_general_dilated(x, w1, (1, 1), "VALID", dimension_numbers=dn)
    y = y + b1.reshape(1, -1, 1, 1)
    y = jax.lax.reduce_window(y, -jnp.inf, jax.lax.max, (1, 1, 2, 2), (1, 1, 2, 2), "VALID")
    y = jnp.maximum(y, 0.0)
    y = jax.lax.conv_general_dilated(y, w2, (1, 1), "VALID", dimension_numbers=dn)
    y = y + b2.reshape(1, -1, 1, 1)
    y = jax.lax.reduce_window(y, -jnp.inf, jax.lax.max, (1, 1, 2, 2), (1, 1, 2, 2), "VALID")
    y = jnp.maximum(y, 0.0)
    y = y.reshape(y.shape[0], -1)
    y = jnp.maximum(y @ fw1.T + fb1, 0.0)
    return y @ fw2.T + fb2


# ---------------------------------- main ----------------------------------- #

if __name__ == "__main__":
    key = jax.random.PRNGKey(0)
    ks = jax.random.split(key, 9)

    # Deterministic synthetic parameters (shapes from SimpleCNN.__init__).
    params = (
        jax.random.normal(ks[0], (10, 1, 5, 5), jnp.float32) * 0.10,   # conv1.weight
        jax.random.normal(ks[1], (10,), jnp.float32) * 0.10,           # conv1.bias
        jax.random.normal(ks[2], (20, 10, 5, 5), jnp.float32) * 0.05,  # conv2.weight
        jax.random.normal(ks[3], (20,), jnp.float32) * 0.05,           # conv2.bias
        jax.random.normal(ks[4], (50, 320), jnp.float32) * 0.05,       # fc1.weight
        jax.random.normal(ks[5], (50,), jnp.float32) * 0.05,           # fc1.bias
        jax.random.normal(ks[6], (10, 50), jnp.float32) * 0.10,        # fc2.weight
        jax.random.normal(ks[7], (10,), jnp.float32) * 0.10,           # fc2.bias
    )

    # Input: batch=2, NCHW [2, 1, 28, 28] (28x28 implied by the 320-flatten).
    x = jax.random.normal(ks[8], (2, 1, 28, 28), jnp.float32)

    prepared = prepare_params(params)                     # f32 (bf16 is a knob)
    out = jax.block_until_ready(simple_cnn_forward(x, prepared))
    assert out.shape == (2, 10), out.shape

    ref = jax.block_until_ready(_ref_forward(x, params))
    if not jnp.allclose(out, ref, atol=5e-3, rtol=5e-3):
        raise AssertionError(
            f"Pallas output mismatch: max abs diff = {jnp.max(jnp.abs(out - ref))}"
        )

    print("KERNEL_OK")
</pallas_src>

<mosaic_0001>
module attributes {stable_mosaic.version = 11 : i64} {
  func.func @_simple_cnn_kernel(%arg0: i32, %arg1: memref<28x8x28xf32, #tpu.memory_space<vmem>>, %arg2: memref<140x256xf32, #tpu.memory_space<vmem>>, %arg3: memref<1x128xf32, #tpu.memory_space<vmem>>, %arg4: memref<640x256xf32, #tpu.memory_space<vmem>>, %arg5: memref<1x128xf32, #tpu.memory_space<vmem>>, %arg6: memref<512x128xf32, #tpu.memory_space<vmem>>, %arg7: memref<1x128xf32, #tpu.memory_space<vmem>>, %arg8: memref<128x128xf32, #tpu.memory_space<vmem>>, %arg9: memref<1x128xf32, #tpu.memory_space<vmem>>, %arg10: memref<8x128xf32, #tpu.memory_space<vmem>>) attributes {dimension_semantics = [#tpu.dimension_semantics<parallel>], iteration_bounds = array<i64: 1>, scalar_prefetch = 0 : i64, scratch_operands = 0 : i64, tpu.core_type = #tpu.core_type<tc>, window_params = [{transform_indices = @transform_0, window_bounds = array<i64: 28, 8, 28>}, {pipeline_mode = #tpu.pipeline_mode<synchronous>, transform_indices = @transform_1, window_bounds = array<i64: 140, 256>}, {pipeline_mode = #tpu.pipeline_mode<synchronous>, transform_indices = @transform_2, window_bounds = array<i64: 1, 128>}, {pipeline_mode = #tpu.pipeline_mode<synchronous>, transform_indices = @transform_3, window_bounds = array<i64: 640, 256>}, {pipeline_mode = #tpu.pipeline_mode<synchronous>, transform_indices = @transform_4, window_bounds = array<i64: 1, 128>}, {pipeline_mode = #tpu.pipeline_mode<synchronous>, transform_indices = @transform_5, window_bounds = array<i64: 512, 128>}, {pipeline_mode = #tpu.pipeline_mode<synchronous>, transform_indices = @transform_6, window_bounds = array<i64: 1, 128>}, {pipeline_mode = #tpu.pipeline_mode<synchronous>, transform_indices = @transform_7, window_bounds = array<i64: 128, 128>}, {pipeline_mode = #tpu.pipeline_mode<synchronous>, transform_indices = @transform_8, window_bounds = array<i64: 1, 128>}, {transform_indices = @transform_9, window_bounds = array<i64: 8, 128>}]} {
    %c0 = arith.constant 0 : index
    %c0_0 = arith.constant 0 : index
    %c0_1 = arith.constant 0 : index
    %0 = vector.load %arg1[%c0, %c0_0, %c0_1] : memref<28x8x28xf32, #tpu.memory_space<vmem>>, vector<28x8x28xf32>
    %1 = vector.extract_strided_slice %0 {offsets = [0, 0, 0], sizes = [24, 8, 28], strides = [1, 1, 1]} : vector<28x8x28xf32> to vector<24x8x28xf32>
    %2 = vector.extract_strided_slice %0 {offsets = [1, 0, 0], sizes = [24, 8, 28], strides = [1, 1, 1]} : vector<28x8x28xf32> to vector<24x8x28xf32>
    %3 = vector.extract_strided_slice %0 {offsets = [2, 0, 0], sizes = [24, 8, 28], strides = [1, 1, 1]} : vector<28x8x28xf32> to vector<24x8x28xf32>
    %4 = vector.extract_strided_slice %0 {offsets = [3, 0, 0], sizes = [24, 8, 28], strides = [1, 1, 1]} : vector<28x8x28xf32> to vector<24x8x28xf32>
    %5 = vector.extract_strided_slice %0 {offsets = [4, 0, 0], sizes = [24, 8, 28], strides = [1, 1, 1]} : vector<28x8x28xf32> to vector<24x8x28xf32>
    %6 = tpu.concatenate %1, %2, %3, %4, %5 in 2 : vector<24x8x28xf32>, vector<24x8x28xf32>, vector<24x8x28xf32>, vector<24x8x28xf32>, vector<24x8x28xf32> -> vector<24x8x140xf32>
    %7 = vector.shape_cast %6 : vector<24x8x140xf32> to vector<192x140xf32>
    %c0_2 = arith.constant 0 : index
    %c0_3 = arith.constant 0 : index
    %8 = vector.load %arg2[%c0_2, %c0_3] : memref<140x256xf32, #tpu.memory_space<vmem>>, vector<140x256xf32>
    %cst = arith.constant dense<0.000000e+00> : vector<192x256xf32>
    %9 = tpu.matmul %7, %8, %cst {dimension_numbers = #tpu.dot_dimension_numbers<[1], [0], [0], [1], [0, 0, 1, 1], [], []>} : vector<192x140xf32>, vector<140x256xf32>, vector<192x256xf32> -> vector<192x256xf32>
    %10 = vector.extract_strided_slice %9 {offsets = [0, 0], sizes = [192, 128], strides = [1, 1]} : vector<192x256xf32> to vector<192x128xf32>
    %11 = vector.extract_strided_slice %9 {offsets = [0, 128], sizes = [192, 128], strides = [1, 1]} : vector<192x256xf32> to vector<192x128xf32>
    %12 = arith.maximumf %10, %11 : vector<192x128xf32>
    %c0_4 = arith.constant 0 : index
    %c0_5 = arith.constant 0 : index
    %13 = vector.load %arg3[%c0_4, %c0_5] : memref<1x128xf32, #tpu.memory_space<vmem>>, vector<1x128xf32>
    %14 = vector.broadcast %13 : vector<1x128xf32> to vector<192x128xf32>
    %15 = arith.addf %12, %14 : vector<192x128xf32>
    %cst_6 = arith.constant 0.000000e+00 : f32
    %16 = vector.broadcast %cst_6 : f32 to vector<192x128xf32>
    %17 = arith.maximumf %15, %16 : vector<192x128xf32>
    %18 = vector.shape_cast %17 : vector<192x128xf32> to vector<12x2x8x128xf32>
    %19 = vector.extract_strided_slice %18 {offsets = [0, 0, 0, 0], sizes = [12, 1, 8, 128], strides = [1, 1, 1, 1]} : vector<12x2x8x128xf32> to vector<12x1x8x128xf32>
    %20 = vector.shape_cast %19 : vector<12x1x8x128xf32> to vector<12x8x128xf32>
    %21 = vector.extract_strided_slice %18 {offsets = [0, 1, 0, 0], sizes = [12, 1, 8, 128], strides = [1, 1, 1, 1]} : vector<12x2x8x128xf32> to vector<12x1x8x128xf32>
    %22 = vector.shape_cast %21 : vector<12x1x8x128xf32> to vector<12x8x128xf32>
    %23 = arith.maximumf %20, %22 : vector<12x8x128xf32>
    %24 = vector.extract_strided_slice %23 {offsets = [0, 0, 0], sizes = [8, 8, 128], strides = [1, 1, 1]} : vector<12x8x128xf32> to vector<8x8x128xf32>
    %25 = vector.extract_strided_slice %23 {offsets = [1, 0, 0], sizes = [8, 8, 128], strides = [1, 1, 1]} : vector<12x8x128xf32> to vector<8x8x128xf32>
    %26 = vector.extract_strided_slice %23 {offsets = [2, 0, 0], sizes = [8, 8, 128], strides = [1, 1, 1]} : vector<12x8x128xf32> to vector<8x8x128xf32>
    %27 = vector.extract_strided_slice %23 {offsets = [3, 0, 0], sizes = [8, 8, 128], strides = [1, 1, 1]} : vector<12x8x128xf32> to vector<8x8x128xf32>
    %28 = vector.extract_strided_slice %23 {offsets = [4, 0, 0], sizes = [8, 8, 128], strides = [1, 1, 1]} : vector<12x8x128xf32> to vector<8x8x128xf32>
    %29 = tpu.concatenate %24, %25, %26, %27, %28 in 2 : vector<8x8x128xf32>, vector<8x8x128xf32>, vector<8x8x128xf32>, vector<8x8x128xf32>, vector<8x8x128xf32> -> vector<8x8x640xf32>
    %30 = vector.shape_cast %29 : vector<8x8x640xf32> to vector<64x640xf32>
    %c0_7 = arith.constant 0 : index
    %c0_8 = arith.constant 0 : index
    %31 = vector.load %arg4[%c0_7, %c0_8] : memref<640x256xf32, #tpu.memory_space<vmem>>, vector<640x256xf32>
    %cst_9 = arith.constant dense<0.000000e+00> : vector<64x256xf32>
    %32 = tpu.matmul %30, %31, %cst_9 {dimension_numbers = #tpu.dot_dimension_numbers<[1], [0], [0], [1], [0, 0, 1, 1], [], []>} : vector<64x640xf32>, vector<640x256xf32>, vector<64x256xf32> -> vector<64x256xf32>
    %33 = vector.extract_strided_slice %32 {offsets = [0, 0], sizes = [64, 128], strides = [1, 1]} : vector<64x256xf32> to vector<64x128xf32>
    %34 = vector.extract_strided_slice %32 {offsets = [0, 128], sizes = [64, 128], strides = [1, 1]} : vector<64x256xf32> to vector<64x128xf32>
    %35 = arith.maximumf %33, %34 : vector<64x128xf32>
    %c0_10 = arith.constant 0 : index
    %c0_11 = arith.constant 0 : index
    %36 = vector.load %arg5[%c0_10, %c0_11] : memref<1x128xf32, #tpu.memory_space<vmem>>, vector<1x128xf32>
    %37 = vector.broadcast %36 : vector<1x128xf32> to vector<64x128xf32>
    %38 = arith.addf %35, %37 : vector<64x128xf32>
    %cst_12 = arith.constant 0.000000e+00 : f32
    %39 = vector.broadcast %cst_12 : f32 to vector<64x128xf32>
    %40 = arith.maximumf %38, %39 : vector<64x128xf32>
    %41 = vector.shape_cast %40 : vector<64x128xf32> to vector<4x2x8x128xf32>
    %42 = vector.extract_strided_slice %41 {offsets = [0, 0, 0, 0], sizes = [4, 1, 8, 128], strides = [1, 1, 1, 1]} : vector<4x2x8x128xf32> to vector<4x1x8x128xf32>
    %43 = vector.shape_cast %42 : vector<4x1x8x128xf32> to vector<4x8x128xf32>
    %44 = vector.extract_strided_slice %41 {offsets = [0, 1, 0, 0], sizes = [4, 1, 8, 128], strides = [1, 1, 1, 1]} : vector<4x2x8x128xf32> to vector<4x1x8x128xf32>
    %45 = vector.shape_cast %44 : vector<4x1x8x128xf32> to vector<4x8x128xf32>
    %46 = arith.maximumf %43, %45 : vector<4x8x128xf32>
    %47 = vector.extract_strided_slice %46 {offsets = [0, 0, 0], sizes = [1, 8, 128], strides = [1, 1, 1]} : vector<4x8x128xf32> to vector<1x8x128xf32>
    %48 = vector.shape_cast %47 : vector<1x8x128xf32> to vector<8x128xf32>
    %49 = vector.extract_strided_slice %46 {offsets = [1, 0, 0], sizes = [1, 8, 128], strides = [1, 1, 1]} : vector<4x8x128xf32> to vector<1x8x128xf32>
    %50 = vector.shape_cast %49 : vector<1x8x128xf32> to vector<8x128xf32>
    %51 = vector.extract_strided_slice %46 {offsets = [2, 0, 0], sizes = [1, 8, 128], strides = [1, 1, 1]} : vector<4x8x128xf32> to vector<1x8x128xf32>
    %52 = vector.shape_cast %51 : vector<1x8x128xf32> to vector<8x128xf32>
    %53 = vector.extract_strided_slice %46 {offsets = [3, 0, 0], sizes = [1, 8, 128], strides = [1, 1, 1]} : vector<4x8x128xf32> to vector<1x8x128xf32>
    %54 = vector.shape_cast %53 : vector<1x8x128xf32> to vector<8x128xf32>
    %55 = tpu.concatenate %48, %50, %52, %54 in 1 : vector<8x128xf32>, vector<8x128xf32>, vector<8x128xf32>, vector<8x128xf32> -> vector<8x512xf32>
    %c0_13 = arith.constant 0 : index
    %c0_14 = arith.constant 0 : index
    %56 = vector.load %arg6[%c0_13, %c0_14] : memref<512x128xf32, #tpu.memory_space<vmem>>, vector<512x128xf32>
    %cst_15 = arith.constant dense<0.000000e+00> : vector<8x128xf32>
    %57 = tpu.matmul %55, %56, %cst_15 {dimension_numbers = #tpu.dot_dimension_numbers<[1], [0], [0], [1], [0, 0, 1, 1], [], []>} : vector<8x512xf32>, vector<512x128xf32>, vector<8x128xf32> -> vector<8x128xf32>
    %c0_16 = arith.constant 0 : index
    %c0_17 = arith.constant 0 : index
    %58 = vector.load %arg7[%c0_16, %c0_17] : memref<1x128xf32, #tpu.memory_space<vmem>>, vector<1x128xf32>
    %59 = vector.broadcast %58 : vector<1x128xf32> to vector<8x128xf32>
    %60 = arith.addf %57, %59 : vector<8x128xf32>
    %cst_18 = arith.constant 0.000000e+00 : f32
    %61 = vector.broadcast %cst_18 : f32 to vector<8x128xf32>
    %62 = arith.maximumf %60, %61 : vector<8x128xf32>
    %c0_19 = arith.constant 0 : index
    %c0_20 = arith.constant 0 : index
    %63 = vector.load %arg8[%c0_19, %c0_20] : memref<128x128xf32, #tpu.memory_space<vmem>>, vector<128x128xf32>
    %cst_21 = arith.constant dense<0.000000e+00> : vector<8x128xf32>
    %64 = tpu.matmul %62, %63, %cst_21 {dimension_numbers = #tpu.dot_dimension_numbers<[1], [0], [0], [1], [0, 0, 1, 1], [], []>} : vector<8x128xf32>, vector<128x128xf32>, vector<8x128xf32> -> vector<8x128xf32>
    %c0_22 = arith.constant 0 : index
    %c0_23 = arith.constant 0 : index
    %65 = vector.load %arg9[%c0_22, %c0_23] : memref<1x128xf32, #tpu.memory_space<vmem>>, vector<1x128xf32>
    %66 = vector.broadcast %65 : vector<1x128xf32> to vector<8x128xf32>
    %67 = arith.addf %64, %66 : vector<8x128xf32>
    %c0_24 = arith.constant 0 : index
    %c0_25 = arith.constant 0 : index
    %68 = vector.load %arg10[%c0_24, %c0_25] : memref<8x128xf32, #tpu.memory_space<vmem>>, vector<8x128xf32>
    tpu.vector_store %arg10[%c0_24, %c0_25], %67 {strides = array<i32>} : memref<8x128xf32, #tpu.memory_space<vmem>>, vector<8x128xf32>,
    return
  }
  func.func @transform_0(%arg0: i32) -> (i32, i32, i32) {
    %c0_i32 = arith.constant 0 : i32
    %c0_i32_0 = arith.constant 0 : i32
    %c0_i32_1 = arith.constant 0 : i32
    return %c0_i32, %arg0, %c0_i32_0 : i32, i32, i32
  }
  func.func @transform_1(%arg0: i32) -> (i32, i32) {
    %c0_i32 = arith.constant 0 : i32
    %c0_i32_0 = arith.constant 0 : i32
    %c0_i32_1 = arith.constant 0 : i32
    return %c0_i32, %c0_i32_0 : i32, i32
  }
  func.func @transform_2(%arg0: i32) -> (i32, i32) {
    %c0_i32 = arith.constant 0 : i32
    %c0_i32_0 = arith.constant 0 : i32
    %c0_i32_1 = arith.constant 0 : i32
    return %c0_i32, %c0_i32_0 : i32, i32
  }
  func.func @transform_3(%arg0: i32) -> (i32, i32) {
    %c0_i32 = arith.constant 0 : i32
    %c0_i32_0 = arith.constant 0 : i32
    %c0_i32_1 = arith.constant 0 : i32
    return %c0_i32, %c0_i32_0 : i32, i32
  }
  func.func @transform_4(%arg0: i32) -> (i32, i32) {
    %c0_i32 = arith.constant 0 : i32
    %c0_i32_0 = arith.constant 0 : i32
    %c0_i32_1 = arith.constant 0 : i32
    return %c0_i32, %c0_i32_0 : i32, i32
  }
  func.func @transform_5(%arg0: i32) -> (i32, i32) {
    %c0_i32 = arith.constant 0 : i32
    %c0_i32_0 = arith.constant 0 : i32
    %c0_i32_1 = arith.constant 0 : i32
    return %c0_i32, %c0_i32_0 : i32, i32
  }
  func.func @transform_6(%arg0: i32) -> (i32, i32) {
    %c0_i32 = arith.constant 0 : i32
    %c0_i32_0 = arith.constant 0 : i32
    %c0_i32_1 = arith.constant 0 : i32
    return %c0_i32, %c0_i32_0 : i32, i32
  }
  func.func @transform_7(%arg0: i32) -> (i32, i32) {
    %c0_i32 = arith.constant 0 : i32
    %c0_i32_0 = arith.constant 0 : i32
    %c0_i32_1 = arith.constant 0 : i32
    return %c0_i32, %c0_i32_0 : i32, i32
  }
  func.func @transform_8(%arg0: i32) -> (i32, i32) {
    %c0_i32 = arith.constant 0 : i32
    %c0_i32_0 = arith.constant 0 : i32
    %c0_i32_1 = arith.constant 0 : i32
    return %c0_i32, %c0_i32_0 : i32, i32
  }
  func.func @transform_9(%arg0: i32) -> (i32, i32) {
    %c0_i32 = arith.constant 0 : i32
    %c0_i32_0 = arith.constant 0 : i32
    return %arg0, %c0_i32 : i32, i32
  }
}

</mosaic_0001>

<bundles_post_ra>
// kernel: tpu_custom_call.1
= control target key start
LH: loop header
LB: loop body
LE: loop exit
PB: predicated region body
PF: predicated region fallthrough
CT: control target
= control target key end

     0   :  { %14 = vsyncpa [#allocation3], 0  ;;  %s2788_s0 = inlined_call_operand.hbm [shape: f32[28,8,28], index: 0, kind: input, shape index: {}]   ;;  %s2789_s1 = inlined_call_operand.hbm [shape: f32[140,256], index: 1, kind: input, shape index: {}]   ;;  %s2790_s2 = inlined_call_operand.vmem [shape: f32[1,128], index: 2, kind: input, shape index: {}]   ;;  %s2791_s3 = inlined_call_operand.hbm [shape: f32[640,256], index: 3, kind: input, shape index: {}]   ;;  %s2792_s4 = inlined_call_operand.vmem [shape: f32[1,128], index: 4, kind: input, shape index: {}]   ;;  %s2793_s5 = inlined_call_operand.hbm [shape: f32[512,128], index: 5, kind: input, shape index: {}]   ;;  %s2794_s6 = inlined_call_operand.vmem [shape: f32[1,128], index: 6, kind: input, shape index: {}]   ;;  %s2795_s7 = inlined_call_operand.hbm [shape: f32[128,128], index: 7, kind: input, shape index: {}]   ;;  %s2796_s8 = inlined_call_operand.vmem [shape: f32[1,128], index: 8, kind: input, shape index: {}]   ;;  %s2797_s9 = inlined_call_operand.hbm [shape: f32[8,128], index: 9, kind: output, shape index: {}]  }
   0x1   :  { %15 = vsyncpa [#allocation6], 0 }
   0x2   :  { %16 = vsyncpa [#allocation9], 0 }
   0x3   :  { %17 = vsyncpa [#allocation4], 0  ;;  %s2259_s30 = smov [#allocation5]  }
   0x4   :  { %s35_s10 = sshll.u32 %s2259_s30, 4  ;;  %s36_s10 = int_to_ptr.vmem [resolvable:$true] %s35_s10 }
   0x5   :  { %s2139_s11 = scalar_lea.vmem %s36_s10, 4608  ;;  %p2144_p1 = scmp.lt.s32.totalorder %s36_s10, %s36_s10 }
   0x6   :  { %p2140_p0 = scmp.ne.s32.totalorder %s36_s10, %s2139_s11  ;;  %p2145_p2 = scmp.lt.s32.totalorder %s2139_s11, %s2139_s11 }
   0x8   :  { %p2146_p3 = por %p2145_p2, %p2144_p1 }
   0xa   :  { %p2147_p4 = pnand %p2146_p3, %p2140_p0 }
   0xc   :  { %2150 = shalt.err (!%p2147_p4)
}
   0xd   :  { %s2260_s12 = smov 256   ;;  %s2261_s13 = smov 16  }
   0xe   :  { %41 = dma.hbm_to_vmem [thread:$0]  %s2789_s1, 4608, %s36_s10, [#allocation6], %s2260_s12, %s2260_s12, %s2261_s13  }
   0xf   :  { %s2262_s16 = smov [#allocation8]   ;;  %s2263_s18 = smov [#allocation2]  }
  0x10   :  { %s63_s17 = sshll.u32 %s2262_s16, 4  ;;  %s23_s19 = sshll.u32 %s2263_s18, 4  ;;  %s64_s17 = int_to_ptr.vmem [resolvable:$true] %s63_s17  ;;  %s24_s19 = int_to_ptr.vmem [resolvable:$true] %s23_s19 }
  0x11   :  { %s2159_s20 = scalar_lea.vmem %s64_s17, 8192  ;;  %p2164_p6 = scmp.lt.s32.totalorder %s64_s17, %s64_s17 }
  0x12   :  { %p2160_p5 = scmp.ne.s32.totalorder %s64_s17, %s2159_s20  ;;  %p2165_p7 = scmp.lt.s32.totalorder %s2159_s20, %s2159_s20 }
  0x14   :  { %p2166_p8 = por %p2165_p7, %p2164_p6 }
  0x16   :  { %p2167_p9 = pnand %p2166_p8, %p2160_p5 }
  0x18   :  { %2170 = shalt.err (!%p2167_p9)
}
  0x19   :  { %s2264_s21 = smov 128   ;;  %s2265_s22 = smov 8  }
  0x1a   :  { %69 = dma.hbm_to_vmem [thread:$0]  %s2793_s5, 8192, %s64_s17, [#allocation9], %s2264_s21, %s2264_s21, %s2265_s22  }
  0x1b   :  { %s2179_s1 = scalar_lea.vmem %s24_s19, 3584  ;;  %p2184_p11 = scmp.lt.s32.totalorder %s24_s19, %s24_s19 }
  0x1c   :  { %p2180_p10 = scmp.ne.s32.totalorder %s24_s19, %s2179_s1  ;;  %p2185_p12 = scmp.lt.s32.totalorder %s2179_s1, %s2179_s1 }
  0x1e   :  { %p2186_p13 = por %p2185_p12, %p2184_p11 }
  0x20   :  { %p2187_p0 = pnand %p2186_p13, %p2180_p10 }
  0x22   :  { %2190 = shalt.err (!%p2187_p0)
}
  0x23   :  { %29 = dma.hbm_to_vmem [thread:$0]  %s2788_s0, 3584, %s24_s19, [#allocation3], %s2264_s21, %s2264_s21, %s2265_s22  }
  0x24   :  { %s2266_s27 = smov [#allocation7]   ;;  %s2267_s29 = smov [#allocation10]  }
  0x25   :  { %s49_s28 = sshll.u32 %s2266_s27, 4  ;;  %s77_s5 = sshll.u32 %s2267_s29, 4  ;;  %s50_s28 = int_to_ptr.vmem [resolvable:$true] %s49_s28  ;;  %s78_s5 = int_to_ptr.vmem [resolvable:$true] %s77_s5 }
  0x26   :  { %s2199_s30 = scalar_lea.vmem %s50_s28, 20480  ;;  %p2204_p2 = scmp.lt.s32.totalorder %s50_s28, %s50_s28 }
  0x27   :  { %p2200_p1 = scmp.ne.s32.totalorder %s50_s28, %s2199_s30  ;;  %p2205_p3 = scmp.lt.s32.totalorder %s2199_s30, %s2199_s30 }
  0x29   :  { %p2206_p4 = por %p2205_p3, %p2204_p2 }
  0x2b   :  { %p2207_p5 = pnand %p2206_p4, %p2200_p1 }
  0x2d   :  { %2210 = shalt.err (!%p2207_p5)
}
  0x2e   :  { %55 = dma.hbm_to_vmem [thread:$0]  %s2791_s3, 20480, %s50_s28, [#allocation6], %s2260_s12, %s2260_s12, %s2261_s13  }
  0x2f   :  { %s2219_s0 = scalar_lea.vmem %s78_s5, 2048  ;;  %p2224_p7 = scmp.lt.s32.totalorder %s78_s5, %s78_s5 }
  0x30   :  { %p2220_p6 = scmp.ne.s32.totalorder %s78_s5, %s2219_s0  ;;  %p2225_p8 = scmp.lt.s32.totalorder %s2219_s0, %s2219_s0 }
  0x32   :  { %p2226_p9 = por %p2225_p8, %p2224_p7 }
  0x34   :  { %p2227_p10 = pnand %p2226_p9, %p2220_p6 }
  0x36   :  { %2230 = shalt.err (!%p2227_p10)
}
  0x37   :  { %83 = dma.hbm_to_vmem [thread:$0]  %s2795_s7, 2048, %s78_s5, [#allocation9], %s2264_s21, %s2264_s21, %s2265_s22  }
  0x38   :  { %2251 = dma.done.wait [#allocation3], 3584  }
  0x39   :  { %2252 = vsyncadd [#allocation3], 4294963712 }
  0x3a   :  { %2253 = dma.done.wait [#allocation6], 25088  }
  0x3b   :  { %2254 = vsyncadd [#allocation6], 4294942208 }
  0x3c   :  { %2255 = dma.done.wait [#allocation9], 10240  }
  0x3d   :  { %2256 = vsyncadd [#allocation9], 4294957056  ;;  %v2355_v0 = vld [vmem:[#allocation2 + $0x18] sm:$0xff]  ;;  %v2357_v1 = vld [vmem:[#allocation2 + $0x20] sm:$0xff]  ;;  %s2268_s3 = smov 84   ;;  %s2269_s7 = smov 28  }
  0x3e   :  { %v2359_v2 = vld [vmem:[#allocation2 + $0x8] sm:$0xff]  ;;  %v1971_v3 = vpack.i.bf16 %v2357_v1, %v2355_v0  ;;  %v2363_v4 = vld [vmem:[#allocation2 + $0x10] sm:$0xff]  ;;  %v575_v7 = vld [vmem:[#allocation5 + $0xf8] sm:$0xff]  ;;  %s2270_s12 = smov 112   ;;  %s2271_s13 = smov 56   ;;  %vm629_vm0 = vcmask 1043456  }
  0x3f   :  { %v1961_v5 = vpack.i.bf16 %v2363_v4, %v2359_v2  ;;  %v1966_v6 = vpack.i.bf16 %v2355_v0, %v2363_v4  ;;  %v574_v8 = vld [vmem:[#allocation5 + $0xf0] sm:$0xff]  ;;  %v573_v9 = vld [vmem:[#allocation5 + $0xe8] sm:$0xff]  ;;  %636 = vmatprep.subr.mxu0 %v575_v7  ;;  %v572_v11 = vld [vmem:[#allocation5 + $0xe0] sm:$0xff]  ;;  %vm580_vm1 = vcmask 97280   ;;  %vm444_vm2 = vcmask 228352   ;;  %s2274_s22 = smov [#allocation11]  }
  0x40   :  { %1972 = vrot.lane.b32.xlu1 %v1971_v3, %s2268_s3  ;;  %v2374_v10 = vld [vmem:[#allocation2 + $0x30] sm:$0xff]  ;;  %v2376_v12 = vld [vmem:[#allocation2 + $0x28] sm:$0xff]  ;;  %637 = vmatpush1.msra.mxu0 %v574_v8  ;;  %v571_v13 = vld [vmem:[#allocation5 + $0xd8] sm:$0xff]  ;;  %vm469_vm3 = vcmask 457728   ;;  %vm494_vm4 = vcmask 687104   ;;  %vm519_vm5 = vcmask 916480  }
  0x41   :  { %1962 = vrot.lane.b32.xlu0 %v1961_v5, %s2269_s7  ;;  %638 = vmatprep.subr.mxu0 %v573_v9  ;;  %v570_v14 = vld [vmem:[#allocation5 + $0xd0] sm:$0xff]  ;;  %v1986_v15 = vpack.i.bf16 %v2374_v10, %v2376_v12  ;;  %v569_v16 = vld [vmem:[#allocation5 + $0xc8] sm:$0xff]  ;;  %v1981_v17 = vpack.i.bf16 %v2376_v12, %v2357_v1  ;;  %v568_v18 = vld [vmem:[#allocation5 + $0xc0] sm:$0xff]  ;;  %vm2273_vm6 = vmmov 0   ;;  %s1782_s23 = sshll.u32 %s2274_s22, 4  ;;  %s1783_s23 = int_to_ptr.vmem [resolvable:$true] %s1782_s23 }
  0x42   :  { %639 = vmatpush1.msra.mxu0 %v572_v11  ;;  %v567_v19 = vld [vmem:[#allocation5 + $0xb8] sm:$0xff]  ;;  %v566_v20 = vld [vmem:[#allocation5 + $0xb0] sm:$0xff]  ;;  %v565_v21 = vld [vmem:[#allocation5 + $0xa8] sm:$0xff]  ;;  %s2231_s24 = scalar_lea.vmem %s1783_s23, 128  ;;  %p2236_p12 = scmp.lt.s32.totalorder %s1783_s23, %s1783_s23 }
  0x43   :  { %640 = vmatprep.subr.mxu0 %v571_v13  ;;  %v2387_v22 = vld [vmem:[#allocation2 + $0x38] sm:$0xff]  ;;  %v564_v23 = vld [vmem:[#allocation5 + $0xa0] sm:$0xff]  ;;  %v562_v25 = vld [vmem:[#allocation5 + $0x90] sm:$0xff]  ;;  %p2232_p11 = scmp.ne.s32.totalorder %s1783_s23, %s2231_s24  ;;  %p2237_p13 = scmp.lt.s32.totalorder %s2231_s24, %s2231_s24 }
  0x44   :  { %372 = vrot.lane.b32.xlu1 %v2357_v1, %s2270_s12  ;;  %641 = vmatpush1.msra.mxu0 %v570_v14  ;;  %v563_v24 = vld [vmem:[#allocation5 + $0x98] sm:$0xff]  ;;  %v1996_v26 = vpack.i.bf16 %v2387_v22, %v2374_v10  ;;  %v561_v27 = vld [vmem:[#allocation5 + $0x88] sm:$0xff]  ;;  %v560_v28 = vld [vmem:[#allocation5 + $0x80] sm:$0xff] }
  0x45   :  { %1967 = vrot.lane.b32.xlu0 %v1966_v6, %s2271_s13  ;;  %642 = vmatprep.subr.mxu0 %v569_v16  ;;  %v2395_v29 = vld [vmem:[#allocation2 + $0x40] sm:$0xff]  ;;  %v559_v30 = vld [vmem:[#allocation5 + $0x78] sm:$0xff]  ;;  %v558_v31 = vld [vmem:[#allocation5 + $0x70] sm:$0xff]  ;;  %p2238_p0 = por %p2237_p13, %p2236_p12 }
  0x46   :  { %643 = vmatpush1.msra.mxu0 %v568_v18  ;;  %v557_v32 = vld [vmem:[#allocation5 + $0x68] sm:$0xff]  ;;  %v2001_v33 = vpack.i.bf16 %v2395_v29, %v2387_v22  ;;  %v556_v34 = vld [vmem:[#allocation5 + $0x60] sm:$0xff]  ;;  %v555_v35 = vld [vmem:[#allocation5 + $0x58] sm:$0xff] }
  0x47   :  { %644 = vmatprep.subr.mxu0 %v567_v19  ;;  %v554_v36 = vld [vmem:[#allocation5 + $0x50] sm:$0xff]  ;;  %v553_v37 = vld [vmem:[#allocation5 + $0x48] sm:$0xff]  ;;  %v552_v39 = vld [vmem:[#allocation5 + $0x40] sm:$0xff]  ;;  %p2239_p1 = pnand %p2238_p0, %p2232_p11 }
  0x48   :  { %1977 = vrot.lane.b32.xlu1 %v1971_v3, %s2269_s7  ;;  %645 = vmatpush1.msra.mxu0 %v566_v20  ;;  %v2404_v38 = vld [vmem:[#allocation2 + $0x50] sm:$0xff]  ;;  %v2406_v40 = vld [vmem:[#allocation2 + $0x48] sm:$0xff]  ;;  %v551_v41 = vld [vmem:[#allocation5 + $0x38] sm:$0xff] }
  0x49   :  { %374 = vrot.lane.b32.xlu0 %v2376_v12, %s2270_s12  ;;  %646 = vmatprep.subr.mxu0 %v565_v21  ;;  %v550_v42 = vld [vmem:[#allocation5 + $0x30] sm:$0xff]  ;;  %v2016_v43 = vpack.i.bf16 %v2404_v38, %v2406_v40  ;;  %v549_v44 = vld [vmem:[#allocation5 + $0x28] sm:$0xff]  ;;  %v2011_v45 = vpack.i.bf16 %v2406_v40, %v2395_v29  ;;  %v548_v46 = vld [vmem:[#allocation5 + $0x20] sm:$0xff] }
  0x4a   :  { %647 = vmatpush1.msra.mxu0 %v564_v23  ;;  %v547_v47 = vld [vmem:[#allocation5 + $0x18] sm:$0xff]  ;;  %v546_v48 = vld [vmem:[#allocation5 + $0x10] sm:$0xff]  ;;  %v545_v49 = vld [vmem:[#allocation5 + $0x8] sm:$0xff] }
  0x4b   :  { %648 = vmatprep.subr.mxu0 %v563_v24  ;;  %v2417_v50 = vld [vmem:[#allocation2 + $0x58] sm:$0xff]  ;;  %v544_v51 = vld [vmem:[#allocation5] sm:$0xff]  ;;  %v578_v53 = vld [vmem:[#allocation5 + $0x110] sm:$0xf] }
  0x4c   :  { %1987 = vrot.lane.b32.xlu1 %v1986_v15, %s2268_s3  ;;  %649 = vmatpush1.msra.mxu0 %v562_v25  ;;  %v579_v52 = vld [vmem:[#allocation5 + $0x118] sm:$0xf]  ;;  %v2026_v54 = vpack.i.bf16 %v2417_v50, %v2404_v38  ;;  %v577_v55 = vld [vmem:[#allocation5 + $0x108] sm:$0xff]  ;;  %v576_v56 = vld [vmem:[#allocation5 + $0x100] sm:$0xff] }
  0x4d   :  { %1982 = vrot.lane.b32.xlu0 %v1981_v17, %s2271_s13  ;;  %650 = vmatprep.subr.mxu0 %v561_v27  ;;  %v2425_v57 = vld [vmem:[#allocation2 + $0x60] sm:$0xff]  ;;  %v2434_v59 = vld [vmem:[#allocation2 + $0x70] sm:$0xff]  ;;  %v2436_v60 = vld [vmem:[#allocation2 + $0x68] sm:$0xff] }
  0x4e   :  { %651 = vmatpush1.msra.mxu0 %v560_v28  ;;  %v2031_v58 = vpack.i.bf16 %v2425_v57, %v2417_v50  ;;  %v2046_v61 = vpack.i.bf16 %v2434_v59, %v2436_v60  ;;  %v2041_v62 = vpack.i.bf16 %v2436_v60, %v2425_v57  ;;  %v2447_v63 = vld [vmem:[#allocation2 + $0x78] sm:$0xff]  ;;  %v2455_v5 = vld [vmem:[#allocation2 + $0x80] sm:$0xff]  ;;  %v2464_v7 = vld [vmem:[#allocation2 + $0x90] sm:$0xff] }
  0x4f   :  { %652 = vmatprep.subr.mxu0 %v559_v30  ;;  %v2056_v3 = vpack.i.bf16 %v2447_v63, %v2434_v59  ;;  %v2061_v6 = vpack.i.bf16 %v2455_v5, %v2447_v63  ;;  %v2466_v8 = vld [vmem:[#allocation2 + $0x88] sm:$0xff]  ;;  %v2477_v13 = vld [vmem:[#allocation2 + $0x98] sm:$0xff]  ;;  %v2494_v17 = vld [vmem:[#allocation2 + $0xb0] sm:$0xff] }
  0x50   :  { %378 = vrot.lane.b32.xlu1 %v2387_v22, %s2270_s12  ;;  %653 = vmatpush1.msra.mxu0 %v558_v31  ;;  %v2076_v9 = vpack.i.bf16 %v2464_v7, %v2466_v8  ;;  %v2071_v11 = vpack.i.bf16 %v2466_v8, %v2455_v5  ;;  %v2086_v14 = vpack.i.bf16 %v2477_v13, %v2464_v7  ;;  %v2496_v18 = vld [vmem:[#allocation2 + $0xa8] sm:$0xff]  ;;  %v2507_v21 = vld [vmem:[#allocation2 + $0xb8] sm:$0xff]  ;;  %v125_v24 = vld [vmem:[#allocation2 + $0xc0] sm:$0xff] }
  0x51   :  { %376 = vrot.lane.b32.xlu0 %v2374_v10, %s2270_s12  ;;  %654 = vmatprep.subr.mxu0 %v557_v32  ;;  %v2106_v19 = vpack.i.bf16 %v2494_v17, %v2496_v18  ;;  %v2116_v23 = vpack.i.bf16 %v2507_v21, %v2494_v17  ;;  %v2121_v25 = vpack.i.bf16 %v125_v24, %v2507_v21  ;;  %v967_v27 = vld [vmem:[#allocation7 + $0xf8] sm:$0xff]  ;;  %v966_v28 = vld [vmem:[#allocation7 + $0xf0] sm:$0xff]  ;;  %v965_v30 = vld [vmem:[#allocation7 + $0xe8] sm:$0xff] }
  0x52   :  { %655 = vmatpush1.msra.mxu0 %v556_v34  ;;  %1096 = vmatprep.subr.mxu1 %v967_v27  ;;  %v964_v31 = vld [vmem:[#allocation7 + $0xe0] sm:$0xff]  ;;  %v963_v32 = vld [vmem:[#allocation7 + $0xd8] sm:$0xff] }
  0x53   :  { %656 = vmatprep.subr.mxu0 %v555_v35  ;;  %1097 = vmatpush1.msra.mxu1 %v966_v28  ;;  %v127_v35 = vld [vmem:[#allocation2 + $0xd0] sm:$0xff]  ;;  %v949_v28 = vld [vmem:[#allocation7 + $0x68] sm:$0xff] }
  0x54   :  { %1997 = vrot.lane.b32.xlu1 %v1996_v26, %s2271_s13  ;;  %657 = vmatpush1.msra.mxu0 %v554_v36  ;;  %v126_v26 = vld [vmem:[#allocation2 + $0xc8] sm:$0xff] }
  0x55   :  { %1992 = vrot.lane.b32.xlu0 %v1986_v15, %s2269_s7  ;;  %658 = vmatprep.subr.mxu0 %v553_v37  ;;  %v2485_v15 = vld [vmem:[#allocation2 + $0xa0] sm:$0xff]  ;;  %v961_v36 = vld [vmem:[#allocation7 + $0xc8] sm:$0xff] }
  0x56   :  { %659 = vmatpush1.msra.mxu0 %v552_v39  ;;  %v2091_v16 = vpack.i.bf16 %v2485_v15, %v2477_v13  ;;  %v2101_v20 = vpack.i.bf16 %v2496_v18, %v2485_v15  ;;  %1098 = vmatprep.subr.mxu1 %v965_v30  ;;  %v960_v39 = vld [vmem:[#allocation7 + $0xc0] sm:$0xff] }
  0x57   :  { %660 = vmatprep.subr.mxu0 %v551_v41  ;;  %1099 = vmatpush1.msra.mxu1 %v964_v31  ;;  %v959_v41 = vld [vmem:[#allocation7 + $0xb8] sm:$0xff] }
  0x58   :  { %380 = vrot.lane.b32.xlu1 %v2395_v29, %s2270_s12  ;;  %661 = vmatpush1.msra.mxu0 %v550_v42 }
  0x59   :  { %2002 = vrot.lane.b32.xlu0 %v2001_v33, %s2268_s3  ;;  %662 = vmatprep.subr.mxu0 %v549_v44  ;;  %v128_v44 = vld [vmem:[#allocation2 + $0xd8] sm:$0xff] }
  0x5a   :  { %663 = vmatpush1.msra.mxu0 %v548_v46  ;;  %1100 = vmatprep.subr.mxu1 %v963_v32  ;;  %v101_v46 = vld [vmem:[#allocation2] sm:$0xff] }
  0x5b   :  { %664 = vmatprep.subr.mxu0 %v547_v47 }
  0x5c   :  { %2007 = vrot.lane.b32.xlu1 %v2001_v33, %s2269_s7  ;;  %665 = vmatpush1.msra.mxu0 %v546_v48  ;;  %v962_v33 = vld [vmem:[#allocation7 + $0xd0] sm:$0xff]  ;;  %v957_v48 = vld [vmem:[#allocation7 + $0xa8] sm:$0xff] }
  0x5d   :  { %382 = vrot.lane.b32.xlu0 %v2406_v40, %s2270_s12  ;;  %666 = vmatprep.subr.mxu0 %v545_v49 }
  0x5e   :  { %667 = vmatpush1.msra.mxu0 %v544_v51  ;;  %1101 = vmatpush1.msra.mxu1 %v962_v33  ;;  %v956_v51 = vld [vmem:[#allocation7 + $0xa0] sm:$0xff] }
  0x5f   :  { %1793 = vmatprep.subr.msk.mxu0 %vm629_vm0, %v579_v52  ;;  %1102 = vmatprep.subr.mxu1 %v961_v36 }
  0x60   :  { %2017 = vrot.lane.b32.xlu1 %v2016_v43, %s2268_s3  ;;  %1794 = vmatpush2.msk.msra.mxu0 %vm629_vm0, %v578_v53 }
  0x61   :  { %2012 = vrot.lane.b32.xlu0 %v2011_v45, %s2271_s13  ;;  %698 = vmatprep.subr.mxu0 %v577_v55  ;;  %v958_v45 = vld [vmem:[#allocation7 + $0xb0] sm:$0xff] }
  0x62   :  { %699 = vmatpush2.msra.mxu0 %v576_v56  ;;  %1103 = vmatpush1.msra.mxu1 %v960_v39  ;;  %v947_v39 = vld [vmem:[#allocation7 + $0x58] sm:$0xff] }
  0x63   :  { %1104 = vmatprep.subr.mxu1 %v959_v41 }
  0x64   :  { %386 = vrot.lane.b32.xlu1 %v2417_v50, %s2270_s12  ;;  %1105 = vmatpush1.msra.mxu1 %v958_v45 }
  0x65   :  { %384 = vrot.lane.b32.xlu0 %v2404_v38, %s2270_s12  ;;  %1106 = vmatprep.subr.mxu1 %v957_v48 }
  0x66   :  { %1107 = vmatpush1.msra.mxu1 %v956_v51 }
  0x68   :  { %2027 = vrot.lane.b32.xlu1 %v2026_v54, %s2271_s13  ;;  %v955_v54 = vld [vmem:[#allocation7 + $0x98] sm:$0xff] }
  0x69   :  { %2022 = vrot.lane.b32.xlu0 %v2016_v43, %s2269_s7  ;;  %1108 = vmatprep.subr.mxu1 %v955_v54  ;;  %v941_v54 = vld [vmem:[#allocation7 + $0x28] sm:$0xff] }
  0x6c   :  { %388 = vrot.lane.b32.xlu1 %v2425_v57, %s2270_s12 }
  0x6d   :  { %2032 = vrot.lane.b32.xlu0 %v2031_v58, %s2268_s3 }
  0x70   :  { %2037 = vrot.lane.b32.xlu1 %v2031_v58, %s2269_s7 }
  0x71   :  { %390 = vrot.lane.b32.xlu0 %v2436_v60, %s2270_s12 }
  0x74   :  { %2047 = vrot.lane.b32.xlu1 %v2046_v61, %s2268_s3 }
  0x75   :  { %2042 = vrot.lane.b32.xlu0 %v2041_v62, %s2271_s13 }
  0x78   :  { %394 = vrot.lane.b32.xlu1 %v2447_v63, %s2270_s12 }
  0x79   :  { %392 = vrot.lane.b32.xlu0 %v2434_v59, %s2270_s12 }
  0x7c   :  { %2057 = vrot.lane.b32.xlu1 %v2056_v3, %s2271_s13 }
  0x7d   :  { %2052 = vrot.lane.b32.xlu0 %v2046_v61, %s2269_s7  ;;  %v954_v61 = vld [vmem:[#allocation7 + $0x90] sm:$0xff] }
  0x7e   :  { %1109 = vmatpush1.msra.mxu1 %v954_v61 }
  0x80   :  { %396 = vrot.lane.b32.xlu1 %v2455_v5, %s2270_s12 }
  0x81   :  { %2062 = vrot.lane.b32.xlu0 %v2061_v6, %s2268_s3 }
  0x84   :  { %2067 = vrot.lane.b32.xlu1 %v2061_v6, %s2269_s7 }
  0x85   :  { %398 = vrot.lane.b32.xlu0 %v2466_v8, %s2270_s12 }
  0x88   :  { %2077 = vrot.lane.b32.xlu1 %v2076_v9, %s2268_s3 }
  0x89   :  { %2072 = vrot.lane.b32.xlu0 %v2071_v11, %s2271_s13 }
  0x8c   :  { %402 = vrot.lane.b32.xlu1 %v2477_v13, %s2270_s12 }
  0x8d   :  { %400 = vrot.lane.b32.xlu0 %v2464_v7, %s2270_s12 }
  0x90   :  { %2087 = vrot.lane.b32.xlu1 %v2086_v14, %s2271_s13 }
  0x91   :  { %2082 = vrot.lane.b32.xlu0 %v2076_v9, %s2269_s7  ;;  %v953_v9 = vld [vmem:[#allocation7 + $0x88] sm:$0xff] }
  0x92   :  { %1110 = vmatprep.subr.mxu1 %v953_v9  ;;  %v938_v9 = vld [vmem:[#allocation7 + $0x10] sm:$0xff] }
  0x94   :  { %404 = vrot.lane.b32.xlu1 %v2485_v15, %s2270_s12 }
  0x95   :  { %2092 = vrot.lane.b32.xlu0 %v2091_v16, %s2268_s3 }
  0x98   :  { %2097 = vrot.lane.b32.xlu1 %v2091_v16, %s2269_s7 }
  0x99   :  { %406 = vrot.lane.b32.xlu0 %v2496_v18, %s2270_s12 }
  0x9c   :  { %2107 = vrot.lane.b32.xlu1 %v2106_v19, %s2268_s3 }
  0x9d   :  { %2102 = vrot.lane.b32.xlu0 %v2101_v20, %s2271_s13  ;;  %v952_v20 = vld [vmem:[#allocation7 + $0x80] sm:$0xff] }
  0x9e   :  { %1111 = vmatpush1.msra.mxu1 %v952_v20  ;;  %v936_v20 = vld [vmem:[#allocation7] sm:$0xff] }
  0xa0   :  { %410 = vrot.lane.b32.xlu1 %v2507_v21, %s2270_s12 }
  0xa1   :  { %408 = vrot.lane.b32.xlu0 %v2494_v17, %s2270_s12 }
  0xa4   :  { %2117 = vrot.lane.b32.xlu1 %v2116_v23, %s2271_s13 }
  0xa5   :  { %2112 = vrot.lane.b32.xlu0 %v2106_v19, %s2269_s7 }
  0xa8   :  { %412 = vrot.lane.b32.xlu1 %v125_v24, %s2270_s12 }
  0xa9   :  { %2122 = vrot.lane.b32.xlu0 %v2121_v25, %s2268_s3 }
  0xac   :  { %2127 = vrot.lane.b32.xlu1 %v2121_v25, %s2269_s7 }
  0xad   :  { %414 = vrot.lane.b32.xlu0 %v126_v26, %s2270_s12 }
  0xb0   :  { %343 = vrot.lane.b32.xlu1 %v126_v26, %s2268_s3 }
  0xb1   :  { %270 = vrot.lane.b32.xlu0 %v125_v24, %s2271_s13  ;;  %v951_v24 = vld [vmem:[#allocation7 + $0x78] sm:$0xff] }
  0xb2   :  { %v1973_v34 = vpop.permute.xlu1 %1972  ;;  %1112 = vmatprep.subr.mxu1 %v951_v24 }
  0xb3   :  { %v1963_v37 = vpop.permute.xlu0 %1962  ;;  %v1974_v55 = vunpack.i.l.bf16 %v1973_v34  ;;  %v1975_v11 = vunpack.i.h.bf16 %v1973_v34  ;;  %v948_v34 = vld [vmem:[#allocation7 + $0x60] sm:$0xff] }
  0xb4   :  { %272 = vrot.lane.b32.xlu1 %v126_v26, %s2271_s13  ;;  %v1965_v42 = vunpack.i.h.bf16 %v1963_v37  ;;  %v1964_v43 = vunpack.i.l.bf16 %v1963_v37  ;;  %v950_v26 = vld [vmem:[#allocation7 + $0x70] sm:$0xff] }
  0xb5   :  { %416 = vrot.lane.b32.xlu0 %v127_v35, %s2270_s12  ;;  %1113 = vmatpush1.msra.mxu1 %v950_v26  ;;  %v999_v26 = vld [vmem:[#allocation7 + $0x1f8] sm:$0xff] }
  0xb6   :  { %v373_v47 = vpop.permute.xlu1 %372  ;;  %v446_v56 = vsel %vm444_vm2, %v2359_v2, %v1965_v42  ;;  %v445_v58 = vsel %vm444_vm2, %v101_v46, %v1964_v43  ;;  %1114 = vmatprep.subr.mxu1 %v949_v28  ;;  %v946_v42 = vld [vmem:[#allocation7 + $0x50] sm:$0xff] }
  0xb7   :  { %v1968_v49 = vpop.permute.xlu0 %1967  ;;  %1795 = vmatprep.mubr.msk.f32.mxu0 %vm580_vm1, %v373_v47  ;;  %1115 = vmatpush1.msra.mxu1 %v948_v34 }
  0xb8   :  { %v1970_v52 = vunpack.i.h.bf16 %v1968_v49  ;;  %v1969_v53 = vunpack.i.l.bf16 %v1968_v49  ;;  %418 = vrot.lane.b32.xlu1 %v128_v44, %s2270_s12  ;;  %1116 = vmatprep.subr.mxu1 %v947_v39  ;;  %v943_v49 = vld [vmem:[#allocation7 + $0x38] sm:$0xff] }
  0xb9   :  { %345 = vrot.lane.b32.xlu0 %v127_v35, %s2268_s3  ;;  %1117 = vmatpush1.msra.mxu1 %v946_v42  ;;  %v995_v39 = vld [vmem:[#allocation7 + $0x1d8] sm:$0xff] }
  0xba   :  { %v1978_v62 = vpop.permute.xlu1 %1977  ;;  %v470_v3 = vsel %vm469_vm3, %v445_v58, %v1969_v53  ;;  %v471_v6 = vsel %vm469_vm3, %v446_v56, %v1970_v52  ;;  %v942_v52 = vld [vmem:[#allocation7 + $0x30] sm:$0xff]  ;;  %v940_v56 = vld [vmem:[#allocation7 + $0x20] sm:$0xff] }
  0xbb   :  { %v1980_v14 = vunpack.i.h.bf16 %v1978_v62  ;;  %v1979_v16 = vunpack.i.l.bf16 %v1978_v62  ;;  %v375_v19 = vpop.permute.xlu0 %374  ;;  %v495_v2 = vsel %vm494_vm4, %v470_v3, %v1974_v55  ;;  %v496_v25 = vsel %vm494_vm4, %v471_v6, %v1975_v11  ;;  %v939_v3 = vld [vmem:[#allocation7 + $0x18] sm:$0xff] }
  0xbc   :  { %v520_v23 = vsel %vm519_vm5, %v495_v2, %v373_v47  ;;  %v521_v37 = vsel %vm519_vm5, %v496_v25, %v375_v19  ;;  %v944_v47 = vld [vmem:[#allocation7 + $0x40] sm:$0xff] }
  0xbd   :  { %701 = vmatmul.mubr.f32.vlgmr.msra.gmra.mxu0 %v520_v23  ;;  %v448_v30 = vsel %vm444_vm2, %v2355_v0, %v1980_v14  ;;  %v447_v31 = vsel %vm444_vm2, %v2363_v4, %v1979_v16  ;;  %v945_v4 = vld [vmem:[#allocation7 + $0x48] sm:$0xff] }
  0xbe   :  { %1796 = vmatprep.mubr.msk.f32.mxu0 %vm580_vm1, %v375_v19  ;;  %v1988_v27 = vpop.permute.xlu1 %1987  ;;  %1118 = vmatprep.subr.mxu1 %v945_v4  ;;  %v937_v16 = vld [vmem:[#allocation7 + $0x8] sm:$0xff] }
  0xbf   :  { %v1989_v32 = vunpack.i.l.bf16 %v1988_v27  ;;  %v1983_v33 = vpop.permute.xlu0 %1982  ;;  %v1990_v41 = vunpack.i.h.bf16 %v1988_v27  ;;  %1119 = vmatpush1.msra.mxu1 %v944_v47  ;;  %v992_v47 = vld [vmem:[#allocation7 + $0x1c0] sm:$0xff] }
  0xc0   :  { %v1985_v35 = vunpack.i.h.bf16 %v1983_v33  ;;  %v1984_v36 = vunpack.i.l.bf16 %v1983_v33  ;;  %1120 = vmatprep.subr.mxu1 %v943_v49 }
  0xc1   :  { %707 = vmatmul.mubr.f32.gmra.mxu0 %v521_v37  ;;  %1121 = vmatpush1.msra.mxu1 %v942_v52 }
  0xc2   :  { %v379_v43 = vpop.permute.xlu1 %378  ;;  %v472_v0 = vsel %vm469_vm3, %v447_v31, %v1984_v36  ;;  %v473_v44 = vsel %vm469_vm3, %v448_v30, %v1985_v35  ;;  %1122 = vmatprep.subr.mxu1 %v941_v54  ;;  %v997_v31 = vld [vmem:[#allocation7 + $0x1e8] sm:$0xff]  ;;  %v996_v36 = vld [vmem:[#allocation7 + $0x1e0] sm:$0xff] }
  0xc3   :  { %v377_v45 = vpop.permute.xlu0 %376  ;;  %v497_v46 = vsel %vm494_vm4, %v472_v0, %v1989_v32  ;;  %v498_v51 = vsel %vm494_vm4, %v473_v44, %v1990_v41  ;;  %1123 = vmatpush1.msra.mxu1 %v940_v56  ;;  %v994_v41 = vld [vmem:[#allocation7 + $0x1d0] sm:$0xff] }
  0xc4   :  { %1797 = vmatprep.mubr.msk.f32.mxu0 %vm580_vm1, %v377_v45  ;;  %v522_v48 = vsel %vm519_vm5, %v497_v46, %v377_v45  ;;  %v523_v62 = vsel %vm519_vm5, %v498_v51, %v379_v43  ;;  %1124 = vmatprep.subr.mxu1 %v939_v3 }
  0xc5   :  { %713 = vmatmul.mubr.f32.gmra.mxu0 %v522_v48  ;;  %1125 = vmatpush1.msra.mxu1 %v938_v9 }
  0xc6   :  { %v1998_v53 = vpop.permute.xlu1 %1997  ;;  %1798 = vmatprep.mubr.msk.f32.mxu0 %vm580_vm1, %v379_v43  ;;  %1126 = vmatprep.subr.mxu1 %v937_v16  ;;  %v993_v43 = vld [vmem:[#allocation7 + $0x1c8] sm:$0xff] }
  0xc7   :  { %v1993_v55 = vpop.permute.xlu0 %1992  ;;  %v1999_v6 = vunpack.i.l.bf16 %v1998_v53  ;;  %v2000_v19 = vunpack.i.h.bf16 %v1998_v53  ;;  %1127 = vmatpush1.msra.mxu1 %v936_v20 }
  0xc8   :  { %v1995_v58 = vunpack.i.h.bf16 %v1993_v55  ;;  %v1994_v61 = vunpack.i.l.bf16 %v1993_v55  ;;  %1128 = vmatprep.subr.mxu1 %v999_v26 }
  0xc9   :  { %719 = vmatmul.mubr.f32.gmra.mxu0 %v523_v62 }
  0xca   :  { %v449_v11 = vsel %vm444_vm2, %v2357_v1, %v1994_v61  ;;  %v381_v14 = vpop.permute.xlu1 %380  ;;  %v450_v23 = vsel %vm444_vm2, %v2376_v12, %v1995_v58  ;;  %v998_v1 = vld [vmem:[#allocation7 + $0x1f0] sm:$0xff] }
  0xcb   :  { %v2003_v2 = vpop.permute.xlu0 %2002  ;;  %1799 = vmatprep.mubr.msk.f32.mxu0 %vm580_vm1, %v381_v14  ;;  %v474_v27 = vsel %vm469_vm3, %v449_v11, %v1999_v6  ;;  %v475_v12 = vsel %vm469_vm3, %v450_v23, %v2000_v19  ;;  %1129 = vmatpush2.msra.mxu1 %v998_v1 }
  0xcc   :  { %v2005_v24 = vunpack.i.h.bf16 %v2003_v2  ;;  %v2004_v25 = vunpack.i.l.bf16 %v2003_v2  ;;  %1130 = vmatprep.subr.mxu1 %v997_v31 }
  0xcd   :  { %1131 = vmatpush2.msra.mxu1 %v996_v36 }
  0xce   :  { %v2008_v28 = vpop.permute.xlu1 %2007  ;;  %v499_v30 = vsel %vm494_vm4, %v474_v27, %v2004_v25  ;;  %v500_v37 = vsel %vm494_vm4, %v475_v12, %v2005_v24  ;;  %1132 = vmatprep.subr.mxu1 %v995_v39 }
  0xcf   :  { %v2010_v32 = vunpack.i.h.bf16 %v2008_v28  ;;  %v2009_v33 = vunpack.i.l.bf16 %v2008_v28  ;;  %v383_v34 = vpop.permute.xlu0 %382  ;;  %v524_v35 = vsel %vm519_vm5, %v499_v30, %v381_v14  ;;  %1133 = vmatpush2.msra.mxu1 %v994_v41 }
  0xd0   :  { %725 = vmatmul.mubr.f32.gmra.mxu0 %v524_v35  ;;  %v525_v46 = vsel %vm519_vm5, %v500_v37, %v383_v34  ;;  %1134 = vmatprep.subr.mxu1 %v993_v43 }
  0xd1   :  { %1800 = vmatprep.mubr.msk.f32.mxu0 %vm580_vm1, %v383_v34  ;;  %v452_v0 = vsel %vm444_vm2, %v2387_v22, %v2010_v32  ;;  %v451_v44 = vsel %vm444_vm2, %v2374_v10, %v2009_v33  ;;  %1135 = vmatpush2.msra.mxu1 %v992_v47 }
  0xd2   :  { %v2018_v42 = vpop.permute.xlu1 %2017 }
  0xd3   :  { %v2019_v4 = vunpack.i.l.bf16 %v2018_v42  ;;  %v2013_v45 = vpop.permute.xlu0 %2012  ;;  %v2020_v51 = vunpack.i.h.bf16 %v2018_v42 }
  0xd4   :  { %v2015_v48 = vunpack.i.h.bf16 %v2013_v45  ;;  %v2014_v49 = vunpack.i.l.bf16 %v2013_v45  ;;  %731 = vmatmul.mubr.f32.gmra.mxu0 %v525_v46 }
  0xd6   :  { %v387_v52 = vpop.permute.xlu1 %386  ;;  %v476_v53 = vsel %vm469_vm3, %v451_v44, %v2014_v49  ;;  %v477_v22 = vsel %vm469_vm3, %v452_v0, %v2015_v48 }
  0xd7   :  { %v385_v54 = vpop.permute.xlu0 %384  ;;  %v501_v10 = vsel %vm494_vm4, %v476_v53, %v2019_v4  ;;  %v502_v56 = vsel %vm494_vm4, %v477_v22, %v2020_v51 }
  0xd8   :  { %1801 = vmatprep.mubr.msk.f32.mxu0 %vm580_vm1, %v385_v54  ;;  %v526_v55 = vsel %vm519_vm5, %v501_v10, %v385_v54  ;;  %v527_v6 = vsel %vm519_vm5, %v502_v56, %v387_v52 }
  0xd9   :  { %737 = vmatmul.mubr.f32.gmra.mxu0 %v526_v55 }
  0xda   :  { %v2028_v58 = vpop.permute.xlu1 %2027  ;;  %1802 = vmatprep.mubr.msk.f32.mxu0 %vm580_vm1, %v387_v52 }
  0xdb   :  { %v2023_v61 = vpop.permute.xlu0 %2022  ;;  %v2029_v9 = vunpack.i.l.bf16 %v2028_v58  ;;  %v2030_v16 = vunpack.i.h.bf16 %v2028_v58 }
  0xdc   :  { %v2025_v62 = vunpack.i.h.bf16 %v2023_v61  ;;  %v2024_v3 = vunpack.i.l.bf16 %v2023_v61 }
  0xdd   :  { %743 = vmatmul.mubr.f32.gmra.mxu0 %v527_v6 }
  0xde   :  { %v453_v11 = vsel %vm444_vm2, %v2395_v29, %v2024_v3  ;;  %v389_v14 = vpop.permute.xlu1 %388  ;;  %v454_v2 = vsel %vm444_vm2, %v2406_v40, %v2025_v62 }
  0xdf   :  { %v2033_v19 = vpop.permute.xlu0 %2032  ;;  %1803 = vmatprep.mubr.msk.f32.mxu0 %vm580_vm1, %v389_v14  ;;  %v478_v24 = vsel %vm469_vm3, %v453_v11, %v2029_v9  ;;  %v479_v30 = vsel %vm469_vm3, %v454_v2, %v2030_v16 }
  0xe0   :  { %v2035_v20 = vunpack.i.h.bf16 %v2033_v19  ;;  %v2034_v23 = vunpack.i.l.bf16 %v2033_v19 }
  0xe2   :  { %v2038_v25 = vpop.permute.xlu1 %2037  ;;  %v503_v26 = vsel %vm494_vm4, %v478_v24, %v2034_v23  ;;  %v504_v31 = vsel %vm494_vm4, %v479_v30, %v2035_v20 }
  0xe3   :  { %v2040_v27 = vunpack.i.h.bf16 %v2038_v25  ;;  %v2039_v1 = vunpack.i.l.bf16 %v2038_v25  ;;  %v391_v28 = vpop.permute.xlu0 %390  ;;  %v528_v29 = vsel %vm519_vm5, %v503_v26, %v389_v14  ;;  %v991_v25 = vld [vmem:[#allocation7 + $0x1b8] sm:$0xff] }
  0xe4   :  { %749 = vmatmul.mubr.f32.gmra.mxu0 %v528_v29  ;;  %v529_v12 = vsel %vm519_vm5, %v504_v31, %v391_v28  ;;  %1136 = vmatprep.subr.mxu1 %v991_v25  ;;  %v988_v31 = vld [vmem:[#allocation7 + $0x1a0] sm:$0xff] }
  0xe5   :  { %1804 = vmatprep.mubr.msk.f32.mxu0 %vm580_vm1, %v391_v28  ;;  %v456_v32 = vsel %vm444_vm2, %v2417_v50, %v2040_v27  ;;  %v455_v33 = vsel %vm444_vm2, %v2404_v38, %v2039_v1  ;;  %v990_v27 = vld [vmem:[#allocation7 + $0x1b0] sm:$0xff] }
  0xe6   :  { %v2048_v40 = vpop.permute.xlu1 %2047  ;;  %1137 = vmatpush2.msra.mxu1 %v990_v27  ;;  %v972_v27 = vld [vmem:[#allocation7 + $0x120] sm:$0xff] }
  0xe7   :  { %v2049_v34 = vunpack.i.l.bf16 %v2048_v40  ;;  %v2043_v35 = vpop.permute.xlu0 %2042  ;;  %v2050_v39 = vunpack.i.h.bf16 %v2048_v40 }
  0xe8   :  { %v2045_v36 = vunpack.i.h.bf16 %v2043_v35  ;;  %v2044_v37 = vunpack.i.l.bf16 %v2043_v35  ;;  %755 = vmatmul.mubr.f32.gmra.mxu0 %v529_v12  ;;  %v985_v12 = vld [vmem:[#allocation7 + $0x188] sm:$0xff] }
  0xea   :  { %v395_v41 = vpop.permute.xlu1 %394  ;;  %v480_v42 = vsel %vm469_vm3, %v455_v33, %v2044_v37  ;;  %v481_v43 = vsel %vm469_vm3, %v456_v32, %v2045_v36  ;;  %v987_v32 = vld [vmem:[#allocation7 + $0x198] sm:$0xff]  ;;  %v984_v37 = vld [vmem:[#allocation7 + $0x180] sm:$0xff] }
  0xeb   :  { %v393_v0 = vpop.permute.xlu0 %392  ;;  %v505_v44 = vsel %vm494_vm4, %v480_v42, %v2049_v34  ;;  %v506_v50 = vsel %vm494_vm4, %v481_v43, %v2050_v39  ;;  %v986_v34 = vld [vmem:[#allocation7 + $0x190] sm:$0xff]  ;;  %v1095_v43 = vld [vmem:[#allocation7 + $0x4f8] sm:$0xff] }
  0xec   :  { %1805 = vmatprep.mubr.msk.f32.mxu0 %vm580_vm1, %v393_v0  ;;  %v530_v38 = vsel %vm519_vm5, %v505_v44, %v393_v0  ;;  %v531_v48 = vsel %vm519_vm5, %v506_v50, %v395_v41  ;;  %v1094_v0 = vld [vmem:[#allocation7 + $0x4f0] sm:$0xff]  ;;  %v983_v44 = vld [vmem:[#allocation7 + $0x178] sm:$0xff]  ;;  %1322 = vmatprep.subr.mxu0 %v1095_v43  ;;  %v1089_v43 = vld [vmem:[#allocation7 + $0x4c8] sm:$0xff] }
  0xed   :  { %761 = vmatmul.mubr.f32.gmra.mxu0 %v530_v38  ;;  %v982_v50 = vld [vmem:[#allocation7 + $0x170] sm:$0xff] }
  0xee   :  { %v2058_v4 = vpop.permute.xlu1 %2057  ;;  %1806 = vmatprep.mubr.msk.f32.mxu0 %vm580_vm1, %v395_v41  ;;  %1323 = vmatpush1.msra.mxu0 %v1094_v0  ;;  %v1088_v0 = vld [vmem:[#allocation7 + $0x4c0] sm:$0xff] }
  0xef   :  { %v2053_v45 = vpop.permute.xlu0 %2052  ;;  %v2059_v49 = vunpack.i.l.bf16 %v2058_v4  ;;  %v2060_v53 = vunpack.i.h.bf16 %v2058_v4 }
  0xf0   :  { %v2055_v46 = vunpack.i.h.bf16 %v2053_v45  ;;  %v2054_v47 = vunpack.i.l.bf16 %v2053_v45 }
  0xf1   :  { %767 = vmatmul.mubr.f32.gmra.mxu0 %v531_v48 }
  0xf2   :  { %v457_v51 = vsel %vm444_vm2, %v2425_v57, %v2054_v47  ;;  %v397_v52 = vpop.permute.xlu1 %396  ;;  %v458_v54 = vsel %vm444_vm2, %v2436_v60, %v2055_v46  ;;  %v981_v47 = vld [vmem:[#allocation7 + $0x168] sm:$0xff] }
  0xf3   :  { %v2063_v22 = vpop.permute.xlu0 %2062  ;;  %1807 = vmatprep.mubr.msk.f32.mxu0 %vm580_vm1, %v397_v52  ;;  %v482_v56 = vsel %vm469_vm3, %v457_v51, %v2059_v49  ;;  %v483_v9 = vsel %vm469_vm3, %v458_v54, %v2060_v53  ;;  %v980_v51 = vld [vmem:[#allocation7 + $0x160] sm:$0xff] }
  0xf4   :  { %v2065_v10 = vunpack.i.h.bf16 %v2063_v22  ;;  %v2064_v55 = vunpack.i.l.bf16 %v2063_v22  ;;  %v979_v22 = vld [vmem:[#allocation7 + $0x158] sm:$0xff] }
  0xf6   :  { %v2068_v58 = vpop.permute.xlu1 %2067  ;;  %v507_v61 = vsel %vm494_vm4, %v482_v56, %v2064_v55  ;;  %v508_v11 = vsel %vm494_vm4, %v483_v9, %v2065_v10  ;;  %v1093_v9 = vld [vmem:[#allocation7 + $0x4e8] sm:$0xff] }
  0xf7   :  { %v2070_v62 = vunpack.i.h.bf16 %v2068_v58  ;;  %v2069_v3 = vunpack.i.l.bf16 %v2068_v58  ;;  %v399_v6 = vpop.permute.xlu0 %398  ;;  %v532_v57 = vsel %vm519_vm5, %v507_v61, %v397_v52  ;;  %1324 = vmatprep.subr.mxu0 %v1093_v9 }
  0xf8   :  { %773 = vmatmul.mubr.f32.gmra.mxu0 %v532_v57  ;;  %v533_v20 = vsel %vm519_vm5, %v508_v11, %v399_v6  ;;  %v976_v57 = vld [vmem:[#allocation7 + $0x140] sm:$0xff] }
  0xf9   :  { %1808 = vmatprep.mubr.msk.f32.mxu0 %vm580_vm1, %v399_v6  ;;  %v460_v14 = vsel %vm444_vm2, %v2447_v63, %v2070_v62  ;;  %v459_v16 = vsel %vm444_vm2, %v2434_v59, %v2069_v3  ;;  %v989_v63 = vld [vmem:[#allocation7 + $0x1a8] sm:$0xff]  ;;  %v1092_v11 = vld [vmem:[#allocation7 + $0x4e0] sm:$0xff] }
  0xfa   :  { %v2078_v60 = vpop.permute.xlu1 %2077  ;;  %1138 = vmatprep.subr.mxu1 %v989_v63  ;;  %1325 = vmatpush1.msra.mxu0 %v1092_v11  ;;  %v1090_v63 = vld [vmem:[#allocation7 + $0x4d0] sm:$0xff]  ;;  %v1079_v11 = vld [vmem:[#allocation7 + $0x478] sm:$0xff] }
  0xfb   :  { %v2079_v19 = vunpack.i.l.bf16 %v2078_v60  ;;  %v2073_v2 = vpop.permute.xlu0 %2072  ;;  %v2080_v26 = vunpack.i.h.bf16 %v2078_v60  ;;  %1139 = vmatpush2.msra.mxu1 %v988_v31  ;;  %v975_v60 = vld [vmem:[#allocation7 + $0x138] sm:$0xff] }
  0xfc   :  { %v2075_v23 = vunpack.i.h.bf16 %v2073_v2  ;;  %v2074_v24 = vunpack.i.l.bf16 %v2073_v2  ;;  %779 = vmatmul.mubr.f32.gmra.mxu0 %v533_v20  ;;  %1140 = vmatprep.subr.mxu1 %v987_v32  ;;  %v973_v2 = vld [vmem:[#allocation7 + $0x128] sm:$0xff] }
  0xfd   :  { %1141 = vmatpush2.msra.mxu1 %v986_v34 }
  0xfe   :  { %v403_v1 = vpop.permute.xlu1 %402  ;;  %v484_v28 = vsel %vm469_vm3, %v459_v16, %v2074_v24  ;;  %v485_v29 = vsel %vm469_vm3, %v460_v14, %v2075_v23  ;;  %1142 = vmatprep.subr.mxu1 %v985_v12  ;;  %v974_v14 = vld [vmem:[#allocation7 + $0x130] sm:$0xff] }
  0xff   :  { %v401_v30 = vpop.permute.xlu0 %400  ;;  %v509_v59 = vsel %vm494_vm4, %v484_v28, %v2079_v19  ;;  %v510_v33 = vsel %vm494_vm4, %v485_v29, %v2080_v26  ;;  %1143 = vmatpush2.msra.mxu1 %v984_v37  ;;  %v1091_v29 = vld [vmem:[#allocation7 + $0x4d8] sm:$0xff] }
 0x100   :  { %1809 = vmatprep.mubr.msk.f32.mxu0 %vm580_vm1, %v401_v30  ;;  %v534_v40 = vsel %vm519_vm5, %v509_v59, %v401_v30  ;;  %v535_v42 = vsel %vm519_vm5, %v510_v33, %v403_v1  ;;  %1144 = vmatprep.subr.mxu1 %v983_v44  ;;  %v971_v30 = vld [vmem:[#allocation7 + $0x118] sm:$0xff]  ;;  %v970_v59 = vld [vmem:[#allocation7 + $0x110] sm:$0xff] }
 0x101   :  { %785 = vmatmul.mubr.f32.gmra.mxu0 %v534_v40  ;;  %1145 = vmatpush2.msra.mxu1 %v982_v50  ;;  %v969_v40 = vld [vmem:[#allocation7 + $0x108] sm:$0xff] }
 0x102   :  { %1810 = vmatprep.mubr.msk.f32.mxu0 %vm580_vm1, %v403_v1  ;;  %v2088_v35 = vpop.permute.xlu1 %2087  ;;  %1146 = vmatprep.subr.mxu1 %v981_v47 }
 0x103   :  { %v2083_v36 = vpop.permute.xlu0 %2082  ;;  %v2089_v38 = vunpack.i.l.bf16 %v2088_v35  ;;  %v2090_v45 = vunpack.i.h.bf16 %v2088_v35  ;;  %1147 = vmatpush2.msra.mxu1 %v980_v51  ;;  %1326 = vmatprep.subr.mxu0 %v1091_v29  ;;  %v968_v35 = vld [vmem:[#allocation7 + $0x100] sm:$0xff]  ;;  %v1086_v51 = vld [vmem:[#allocation7 + $0x4b0] sm:$0xff] }
 0x104   :  { %v2085_v39 = vunpack.i.h.bf16 %v2083_v36  ;;  %v2084_v41 = vunpack.i.l.bf16 %v2083_v36  ;;  %1148 = vmatprep.subr.mxu1 %v979_v22  ;;  %1327 = vmatpush1.msra.mxu0 %v1090_v63  ;;  %v1085_v22 = vld [vmem:[#allocation7 + $0x4a8] sm:$0xff]  ;;  %v1072_v29 = vld [vmem:[#allocation7 + $0x440] sm:$0xff] }
 0x105   :  { %791 = vmatmul.mubr.f32.gmra.mxu0 %v535_v42  ;;  %1328 = vmatprep.subr.mxu0 %v1089_v43 }
 0x106   :  { %v461_v4 = vsel %vm444_vm2, %v2455_v5, %v2084_v41  ;;  %v405_v46 = vpop.permute.xlu1 %404  ;;  %v462_v48 = vsel %vm444_vm2, %v2466_v8, %v2085_v39  ;;  %v978_v5 = vld [vmem:[#allocation7 + $0x150] sm:$0xff]  ;;  %v977_v8 = vld [vmem:[#allocation7 + $0x148] sm:$0xff]  ;;  %1329 = vmatpush1.msra.mxu0 %v1088_v0 }
 0x107   :  { %v2093_v49 = vpop.permute.xlu0 %2092  ;;  %1811 = vmatprep.mubr.msk.f32.mxu0 %vm580_vm1, %v405_v46  ;;  %v486_v54 = vsel %vm469_vm3, %v461_v4, %v2089_v38  ;;  %v487_v56 = vsel %vm469_vm3, %v462_v48, %v2090_v45  ;;  %1149 = vmatpush2.msra.mxu1 %v978_v5 }
 0x108   :  { %v2095_v52 = vunpack.i.h.bf16 %v2093_v49  ;;  %v2094_v53 = vunpack.i.l.bf16 %v2093_v49  ;;  %1150 = vmatprep.subr.mxu1 %v977_v8 }
 0x109   :  { %1151 = vmatpush2.msra.mxu1 %v976_v57  ;;  %v1080_v57 = vld [vmem:[#allocation7 + $0x480] sm:$0xff] }
 0x10a   :  { %v2098_v10 = vpop.permute.xlu1 %2097  ;;  %v511_v55 = vsel %vm494_vm4, %v486_v54, %v2094_v53  ;;  %v512_v6 = vsel %vm494_vm4, %v487_v56, %v2095_v52  ;;  %1152 = vmatprep.subr.mxu1 %v975_v60 }
 0x10b   :  { %v407_v58 = vpop.permute.xlu0 %406  ;;  %v2100_v61 = vunpack.i.h.bf16 %v2098_v10  ;;  %v2099_v62 = vunpack.i.l.bf16 %v2098_v10  ;;  %v536_v3 = vsel %vm519_vm5, %v511_v55, %v405_v46  ;;  %1153 = vmatpush2.msra.mxu1 %v974_v14  ;;  %v1087_v46 = vld [vmem:[#allocation7 + $0x4b8] sm:$0xff]  ;;  %v1078_v14 = vld [vmem:[#allocation7 + $0x470] sm:$0xff] }
 0x10c   :  { %797 = vmatmul.mubr.f32.gmra.mxu0 %v536_v3  ;;  %v537_v19 = vsel %vm519_vm5, %v512_v6, %v407_v58  ;;  %1154 = vmatprep.subr.mxu1 %v973_v2  ;;  %v1083_v10 = vld [vmem:[#allocation7 + $0x498] sm:$0xff]  ;;  %v1077_v2 = vld [vmem:[#allocation7 + $0x468] sm:$0xff] }
 0x10d   :  { %1812 = vmatprep.mubr.msk.f32.mxu0 %vm580_vm1, %v407_v58  ;;  %v464_v20 = vsel %vm444_vm2, %v2477_v13, %v2100_v61  ;;  %v463_v23 = vsel %vm444_vm2, %v2464_v7, %v2099_v62  ;;  %1155 = vmatpush2.msra.mxu1 %v972_v27  ;;  %v1031_v58 = vld [vmem:[#allocation7 + $0x2f8] sm:$0xff]  ;;  %v1082_v61 = vld [vmem:[#allocation7 + $0x490] sm:$0xff]  ;;  %v1081_v62 = vld [vmem:[#allocation7 + $0x488] sm:$0xff] }
 0x10e   :  { %v2108_v16 = vpop.permute.xlu1 %2107  ;;  %1156 = vmatprep.subr.mxu1 %v971_v30  ;;  %1330 = vmatprep.subr.mxu0 %v1087_v46  ;;  %v1071_v30 = vld [vmem:[#allocation7 + $0x438] sm:$0xff] }
 0x10f   :  { %v2103_v24 = vpop.permute.xlu0 %2102  ;;  %v2110_v25 = vunpack.i.h.bf16 %v2108_v16  ;;  %v2109_v26 = vunpack.i.l.bf16 %v2108_v16  ;;  %1157 = vmatpush2.msra.mxu1 %v970_v59  ;;  %1331 = vmatpush1.msra.mxu0 %v1086_v51 }
 0x110   :  { %v2105_v1 = vunpack.i.h.bf16 %v2103_v24  ;;  %v2104_v28 = vunpack.i.l.bf16 %v2103_v24  ;;  %803 = vmatmul.mubr.f32.gmra.mxu0 %v537_v19  ;;  %1158 = vmatprep.subr.mxu1 %v969_v40  ;;  %v1075_v24 = vld [vmem:[#allocation7 + $0x458] sm:$0xff]  ;;  %v1069_v40 = vld [vmem:[#allocation7 + $0x428] sm:$0xff] }
 0x111   :  { %1159 = vmatpush2.msra.mxu1 %v968_v35  ;;  %1332 = vmatprep.subr.mxu0 %v1085_v22  ;;  %v1065_v35 = vld [vmem:[#allocation7 + $0x408] sm:$0xff] }
 0x112   :  { %v411_v31 = vpop.permute.xlu1 %410  ;;  %v488_v13 = vsel %vm469_vm3, %v463_v23, %v2104_v28  ;;  %v489_v7 = vsel %vm469_vm3, %v464_v20, %v2105_v1  ;;  %1209 = vmatprep.subr.mxu1 %v1031_v58  ;;  %v1076_v20 = vld [vmem:[#allocation7 + $0x460] sm:$0xff]  ;;  %v1073_v28 = vld [vmem:[#allocation7 + $0x448] sm:$0xff] }
 0x113   :  { %v409_v32 = vpop.permute.xlu0 %408  ;;  %v513_v33 = vsel %vm494_vm4, %v488_v13, %v2109_v26  ;;  %v514_v34 = vsel %vm494_vm4, %v489_v7, %v2110_v25  ;;  %v1074_v26 = vld [vmem:[#allocation7 + $0x450] sm:$0xff] }
 0x114   :  { %1813 = vmatprep.mubr.msk.f32.mxu0 %vm580_vm1, %v409_v32  ;;  %v538_v12 = vsel %vm519_vm5, %v513_v33, %v409_v32  ;;  %v539_v37 = vsel %vm519_vm5, %v514_v34, %v411_v31  ;;  %v1068_v32 = vld [vmem:[#allocation7 + $0x420] sm:$0xff]  ;;  %v1067_v33 = vld [vmem:[#allocation7 + $0x418] sm:$0xff]  ;;  %v1066_v34 = vld [vmem:[#allocation7 + $0x410] sm:$0xff] }
 0x115   :  { %809 = vmatmul.mubr.f32.gmra.mxu0 %v538_v12  ;;  %v1064_v12 = vld [vmem:[#allocation7 + $0x400] sm:$0xff] }
 0x116   :  { %v2118_v36 = vpop.permute.xlu1 %2117  ;;  %1814 = vmatprep.mubr.msk.f32.mxu0 %vm580_vm1, %v411_v31 }
 0x117   :  { %v2113_v39 = vpop.permute.xlu0 %2112  ;;  %v2120_v41 = vunpack.i.h.bf16 %v2118_v36  ;;  %v2119_v42 = vunpack.i.l.bf16 %v2118_v36  ;;  %v2272_v36 = vmov 0.0  }
 0x118   :  { %v2115_v44 = vunpack.i.h.bf16 %v2113_v39  ;;  %v2114_v38 = vunpack.i.l.bf16 %v2113_v39 }
 0x119   :  { %815 = vmatmul.mubr.f32.gmra.mxu0 %v539_v37 }
 0x11a   :  { %v466_v50 = vsel %vm444_vm2, %v2496_v18, %v2115_v44  ;;  %v465_v4 = vsel %vm444_vm2, %v2485_v15, %v2114_v38  ;;  %v413_v45 = vpop.permute.xlu1 %412  ;;  %v1084_v18 = vld [vmem:[#allocation7 + $0x4a0] sm:$0xff] }
 0x11b   :  { %v2123_v47 = vpop.permute.xlu0 %2122  ;;  %1815 = vmatprep.mubr.msk.f32.mxu0 %vm580_vm1, %v413_v45  ;;  %v490_v48 = vsel %vm469_vm3, %v465_v4, %v2119_v42  ;;  %v491_v49 = vsel %vm469_vm3, %v466_v50, %v2120_v41  ;;  %1333 = vmatpush1.msra.mxu0 %v1084_v18 }
 0x11c   :  { %v2125_v52 = vunpack.i.h.bf16 %v2123_v47  ;;  %v2124_v53 = vunpack.i.l.bf16 %v2123_v47  ;;  %1334 = vmatprep.subr.mxu0 %v1083_v10 }
 0x11d   :  { %1335 = vmatpush1.msra.mxu0 %v1082_v61  ;;  %v1029_v61 = vld [vmem:[#allocation7 + $0x2e8] sm:$0xff] }
 0x11e   :  { %v2128_v54 = vpop.permute.xlu1 %2127  ;;  %v515_v15 = vsel %vm494_vm4, %v490_v48, %v2124_v53  ;;  %v516_v5 = vsel %vm494_vm4, %v491_v49, %v2125_v52  ;;  %1336 = vmatprep.subr.mxu0 %v1081_v62  ;;  %v1028_v62 = vld [vmem:[#allocation7 + $0x2e0] sm:$0xff] }
 0x11f   :  { %v415_v55 = vpop.permute.xlu0 %414  ;;  %v2129_v56 = vunpack.i.l.bf16 %v2128_v54  ;;  %v540_v8 = vsel %vm519_vm5, %v515_v15, %v413_v45  ;;  %1337 = vmatpush1.msra.mxu0 %v1080_v57  ;;  %v2130_v16 = vunpack.i.h.bf16 %v2128_v54  ;;  %v2675_v45 = vld [vmem:[%s2790_s2] ss:$0 sm:$0xff] }
 0x120   :  { %821 = vmatmul.mubr.f32.gmra.mxu0 %v540_v8  ;;  %v541_v6 = vsel %vm519_vm5, %v516_v5, %v415_v55  ;;  %1338 = vmatprep.subr.mxu0 %v1079_v11  ;;  %v1030_v8 = vld [vmem:[#allocation7 + $0x2f0] sm:$0xff] }
 0x121   :  { %v467_v3 = vsel %vm444_vm2, %v2494_v17, %v2129_v56  ;;  %1816 = vmatprep.mubr.msk.f32.mxu0 %vm580_vm1, %v415_v55  ;;  %1339 = vmatpush1.msra.mxu0 %v1078_v14  ;;  %v468_v27 = vsel %vm444_vm2, %v2507_v21, %v2130_v16  ;;  %v1070_v21 = vld [vmem:[#allocation7 + $0x430] sm:$0xff] }
 0x122   :  { %v344_v9 = vpop.permute.xlu1 %343  ;;  %1340 = vmatprep.subr.mxu0 %v1077_v2  ;;  %v1026_v11 = vld [vmem:[#allocation7 + $0x2d0] sm:$0xff]  ;;  %v1023_v2 = vld [vmem:[#allocation7 + $0x2b8] sm:$0xff] }
 0x123   :  { %v271_v60 = vpop.permute.xlu0 %270  ;;  %1341 = vmatpush1.msra.mxu0 %v1076_v20 }
 0x124   :  { %v492_v19 = vsel %vm469_vm3, %v467_v3, %v271_v60  ;;  %827 = vmatmul.mubr.f32.gmra.mxu0 %v541_v6  ;;  %1342 = vmatprep.subr.mxu0 %v1075_v24  ;;  %v1027_v6 = vld [vmem:[#allocation7 + $0x2d8] sm:$0xff]  ;;  %v1025_v60 = vld [vmem:[#allocation7 + $0x2c8] sm:$0xff]  ;;  %v1022_v24 = vld [vmem:[#allocation7 + $0x2b0] sm:$0xff] }
 0x125   :  { %v517_v17 = vsel %vm494_vm4, %v492_v19, %v344_v9  ;;  %1343 = vmatpush1.msra.mxu0 %v1074_v26  ;;  %v1024_v19 = vld [vmem:[#allocation7 + $0x2c0] sm:$0xff]  ;;  %v1021_v26 = vld [vmem:[#allocation7 + $0x2a8] sm:$0xff] }
 0x126   :  { %v273_v23 = vpop.permute.xlu1 %272  ;;  %1344 = vmatprep.subr.mxu0 %v1073_v28  ;;  %v1020_v28 = vld [vmem:[#allocation7 + $0x2a0] sm:$0xff] }
 0x127   :  { %v417_v25 = vpop.permute.xlu0 %416  ;;  %v493_v59 = vsel %vm469_vm3, %v468_v27, %v273_v23  ;;  %1345 = vmatpush1.msra.mxu0 %v1072_v29 }
 0x128   :  { %1817 = vmatprep.mubr.msk.f32.mxu0 %vm580_vm1, %v417_v25  ;;  %v542_v1 = vsel %vm519_vm5, %v517_v17, %v417_v25  ;;  %1346 = vmatprep.subr.mxu0 %v1071_v30 }
 0x129   :  { %833 = vmatmul.mubr.f32.gmra.mxu0 %v542_v1 }
 0x12a   :  { %v419_v63 = vpop.permute.xlu1 %418  ;;  %1347 = vmatpush1.msra.mxu0 %v1070_v21 }
 0x12b   :  { %v346_v31 = vpop.permute.xlu0 %345  ;;  %1818 = vmatprep.mubr.msk.f32.mxu0 %vm580_vm1, %v419_v63  ;;  %1348 = vmatprep.subr.mxu0 %v1069_v40  ;;  %v1015_v40 = vld [vmem:[#allocation7 + $0x278] sm:$0xff] }
 0x12c   :  { %v518_v13 = vsel %vm494_vm4, %v493_v59, %v346_v31  ;;  %1349 = vmatpush1.msra.mxu0 %v1068_v32  ;;  %v1018_v31 = vld [vmem:[#allocation7 + $0x290] sm:$0xff] }
 0x12d   :  { %v543_v7 = vsel %vm519_vm5, %v518_v13, %v419_v63  ;;  %1350 = vmatprep.subr.mxu0 %v1067_v33  ;;  %v1019_v63 = vld [vmem:[#allocation7 + $0x298] sm:$0xff]  ;;  %v1017_v13 = vld [vmem:[#allocation7 + $0x288] sm:$0xff] }
 0x12e   :  { %839 = vmatmul.mubr.f32.gmra.mxu0 %v543_v7  ;;  %v1016_v7 = vld [vmem:[#allocation7 + $0x280] sm:$0xff] }
 0x12f   :  { %1386 = vmatprep.mubr.f32.mxu0 %v2272_v36  ;;  %1351 = vmatpush1.msra.mxu0 %v1066_v34 }
 0x130   :  { %1352 = vmatprep.subr.mxu0 %v1065_v35  ;;  %v1014_v35 = vld [vmem:[#allocation7 + $0x270] sm:$0xff] }
 0x131   :  { %1353 = vmatpush1.msra.mxu0 %v1064_v12  ;;  %v1013_v12 = vld [vmem:[#allocation7 + $0x268] sm:$0xff] }
 0x17d   :  { %v702_v37 = vpop.f32.mrf.mxu0 }
 0x17f   :  { %v704_v39 = vpop.f32.mrf.mxu0 }
 0x180   :  { %v845_v50 = vmax.f32 %v702_v37, %v704_v39 }
 0x181   :  { %v708_v41 = vpop.f32.mrf.mxu0 }
 0x182   :  { %v876_v51 = vadd.f32 %v2675_v45, %v845_v50  ;;  %v1009_v50 = vld [vmem:[#allocation7 + $0x248] sm:$0xff] }
 0x183   :  { %v710_v42 = vpop.f32.mrf.mxu0 }
 0x184   :  { %v846_v0 = vmax.f32 %v708_v41, %v710_v42  ;;  %v900_v15 = vmax.f32 %v876_v51, 0.0  ;;  %v1012_v42 = vld [vmem:[#allocation7 + $0x260] sm:$0xff] }
 0x185   :  { %v714_v43 = vpop.f32.mrf.mxu0 }
 0x186   :  { %v877_v46 = vadd.f32 %v2675_v45, %v846_v0  ;;  %v1011_v0 = vld [vmem:[#allocation7 + $0x258] sm:$0xff] }
 0x187   :  { %v716_v44 = vpop.f32.mrf.mxu0 }
 0x188   :  { %v847_v38 = vmax.f32 %v714_v43, %v716_v44  ;;  %v901_v53 = vmax.f32 %v877_v46, 0.0  ;;  %v1010_v44 = vld [vmem:[#allocation7 + $0x250] sm:$0xff] }
 0x189   :  { %v720_v4 = vpop.f32.mrf.mxu0 }
 0x18a   :  { %v878_v48 = vadd.f32 %v2675_v45, %v847_v38  ;;  %v924_v56 = vmax.f32 %v900_v15, %v901_v53  ;;  %v1005_v53 = vld [vmem:[#allocation7 + $0x228] sm:$0xff]  ;;  %v1004_v15 = vld [vmem:[#allocation7 + $0x220] sm:$0xff] }
 0x18b   :  { %v722_v47 = vpop.f32.mrf.mxu0 }
 0x18c   :  { %v848_v49 = vmax.f32 %v720_v4, %v722_v47  ;;  %v902_v22 = vmax.f32 %v878_v48, 0.0  ;;  %v1008_v47 = vld [vmem:[#allocation7 + $0x240] sm:$0xff]  ;;  %v1007_v48 = vld [vmem:[#allocation7 + $0x238] sm:$0xff] }
 0x18e   :  { %v879_v52 = vadd.f32 %v2675_v45, %v848_v49 }
 0x190   :  { %v903_v18 = vmax.f32 %v879_v52, 0.0  ;;  %v726_v54 = vpop.f32.mrf.mxu0  ;;  %v1006_v52 = vld [vmem:[#allocation7 + $0x230] sm:$0xff] }
 0x192   :  { %v728_v5 = vpop.f32.mrf.mxu0  ;;  %v925_v10 = vmax.f32 %v902_v22, %v903_v18 }
 0x193   :  { %v849_v55 = vmax.f32 %v726_v54, %v728_v5 }
 0x194   :  { %v732_v58 = vpop.f32.mrf.mxu0  ;;  %1160 = vmatprep.mubr.f32.mxu1 %v925_v10 }
 0x195   :  { %1161 = vmatmul.mubr.f32.vlgmr.msra.gmra.mxu1 %v924_v56  ;;  %v880_v57 = vadd.f32 %v2675_v45, %v849_v55  ;;  %v1003_v56 = vld [vmem:[#allocation7 + $0x218] sm:$0xff] }
 0x196   :  { %v734_v3 = vpop.f32.mrf.mxu0  ;;  %1210 = vmatpush1.msra.mxu1 %v1030_v8 }
 0x197   :  { %v850_v9 = vmax.f32 %v732_v58, %v734_v3  ;;  %1211 = vmatprep.subr.mxu1 %v1029_v61  ;;  %v904_v17 = vmax.f32 %v880_v57, 0.0  ;;  %v1002_v58 = vld [vmem:[#allocation7 + $0x210] sm:$0xff]  ;;  %v1001_v3 = vld [vmem:[#allocation7 + $0x208] sm:$0xff] }
 0x198   :  { %1212 = vmatpush1.msra.mxu1 %v1028_v62 }
 0x199   :  { %v881_v14 = vadd.f32 %v2675_v45, %v850_v9  ;;  %v738_v16 = vpop.f32.mrf.mxu0  ;;  %1213 = vmatprep.subr.mxu1 %v1027_v6  ;;  %v1000_v6 = vld [vmem:[#allocation7 + $0x200] sm:$0xff]  ;;  %v1063_v9 = vld [vmem:[#allocation7 + $0x3f8] sm:$0xff] }
 0x19a   :  { %1214 = vmatpush1.msra.mxu1 %v1026_v11  ;;  %v1062_v11 = vld [vmem:[#allocation7 + $0x3f0] sm:$0xff] }
 0x19b   :  { %v905_v20 = vmax.f32 %v881_v14, 0.0  ;;  %v740_v23 = vpop.f32.mrf.mxu0  ;;  %1215 = vmatprep.subr.mxu1 %v1025_v60 }
 0x19c   :  { %v851_v25 = vmax.f32 %v738_v16, %v740_v23  ;;  %1216 = vmatpush1.msra.mxu1 %v1024_v19  ;;  %v1061_v19 = vld [vmem:[#allocation7 + $0x3e8] sm:$0xff]  ;;  %v1060_v23 = vld [vmem:[#allocation7 + $0x3e0] sm:$0xff] }
 0x19d   :  { %v744_v27 = vpop.f32.mrf.mxu0  ;;  %v2683_v1 = vmax.f32 %v904_v17, %v905_v20  ;;  %1217 = vmatprep.subr.mxu1 %v1023_v2 }
 0x19e   :  { %1218 = vmatpush1.msra.mxu1 %v1022_v24  ;;  %v882_v30 = vadd.f32 %v2675_v45, %v851_v25  ;;  %v1059_v25 = vld [vmem:[#allocation7 + $0x3d8] sm:$0xff] }
 0x19f   :  { %v746_v29 = vpop.f32.mrf.mxu0  ;;  %1166 = vmatprep.mubr.f32.mxu1 %v2683_v1  ;;  %1219 = vmatprep.subr.mxu1 %v1021_v26  ;;  %v1058_v26 = vld [vmem:[#allocation7 + $0x3d0] sm:$0xff] }
 0x1a0   :  { %v852_v59 = vmax.f32 %v744_v27, %v746_v29  ;;  %1167 = vmatmul.mubr.f32.gmra.mxu1 %v925_v10  ;;  %v906_v32 = vmax.f32 %v882_v30, 0.0  ;;  %v1056_v30 = vld [vmem:[#allocation7 + $0x3c0] sm:$0xff] }
 0x1a1   :  { %1220 = vmatpush1.msra.mxu1 %v1020_v28  ;;  %v1057_v28 = vld [vmem:[#allocation7 + $0x3c8] sm:$0xff] }
 0x1a2   :  { %v883_v21 = vadd.f32 %v2675_v45, %v852_v59  ;;  %1221 = vmatprep.subr.mxu1 %v1019_v63  ;;  %v1055_v59 = vld [vmem:[#allocation7 + $0x3b8] sm:$0xff] }
 0x1a3   :  { %1222 = vmatpush1.msra.mxu1 %v1018_v31 }
 0x1a4   :  { %v907_v33 = vmax.f32 %v883_v21, 0.0  ;;  %v750_v34 = vpop.f32.mrf.mxu0  ;;  %1223 = vmatprep.subr.mxu1 %v1017_v13  ;;  %v1054_v21 = vld [vmem:[#allocation7 + $0x3b0] sm:$0xff] }
 0x1a5   :  { %1224 = vmatpush1.msra.mxu1 %v1016_v7  ;;  %v1053_v7 = vld [vmem:[#allocation7 + $0x3a8] sm:$0xff] }
 0x1a6   :  { %v2688_v37 = vmax.f32 %v906_v32, %v907_v33  ;;  %v752_v39 = vpop.f32.mrf.mxu0  ;;  %1225 = vmatprep.subr.mxu1 %v1015_v40 }
 0x1a7   :  { %v853_v41 = vmax.f32 %v750_v34, %v752_v39  ;;  %1226 = vmatpush1.msra.mxu1 %v1014_v35  ;;  %v1052_v34 = vld [vmem:[#allocation7 + $0x3a0] sm:$0xff] }
 0x1a8   :  { %v756_v43 = vpop.f32.mrf.mxu0  ;;  %1172 = vmatprep.mubr.f32.mxu1 %v2688_v37  ;;  %1227 = vmatprep.subr.mxu1 %v1013_v12 }
 0x1a9   :  { %1173 = vmatmul.mubr.f32.gmra.mxu1 %v2683_v1  ;;  %v884_v4 = vadd.f32 %v2675_v45, %v853_v41  ;;  %v1051_v41 = vld [vmem:[#allocation7 + $0x398] sm:$0xff] }
 0x1aa   :  { %v758_v38 = vpop.f32.mrf.mxu0  ;;  %1228 = vmatpush1.msra.mxu1 %v1012_v42  ;;  %v1050_v42 = vld [vmem:[#allocation7 + $0x390] sm:$0xff] }
 0x1ab   :  { %v854_v46 = vmax.f32 %v756_v43, %v758_v38  ;;  %1229 = vmatprep.subr.mxu1 %v1011_v0  ;;  %v908_v22 = vmax.f32 %v884_v4, 0.0  ;;  %v1049_v0 = vld [vmem:[#allocation7 + $0x388] sm:$0xff]  ;;  %v1047_v4 = vld [vmem:[#allocation7 + $0x378] sm:$0xff] }
 0x1ac   :  { %1230 = vmatpush1.msra.mxu1 %v1010_v44 }
 0x1ad   :  { %v885_v49 = vadd.f32 %v2675_v45, %v854_v46  ;;  %v762_v51 = vpop.f32.mrf.mxu0  ;;  %1231 = vmatprep.subr.mxu1 %v1009_v50  ;;  %v1048_v50 = vld [vmem:[#allocation7 + $0x380] sm:$0xff] }
 0x1ae   :  { %1232 = vmatpush1.msra.mxu1 %v1008_v47  ;;  %v1046_v47 = vld [vmem:[#allocation7 + $0x370] sm:$0xff] }
 0x1af   :  { %v909_v18 = vmax.f32 %v885_v49, 0.0  ;;  %v764_v54 = vpop.f32.mrf.mxu0  ;;  %1233 = vmatprep.subr.mxu1 %v1007_v48  ;;  %v1045_v48 = vld [vmem:[#allocation7 + $0x368] sm:$0xff] }
 0x1b0   :  { %v855_v5 = vmax.f32 %v762_v51, %v764_v54  ;;  %1234 = vmatpush1.msra.mxu1 %v1006_v52  ;;  %v1043_v54 = vld [vmem:[#allocation7 + $0x358] sm:$0xff] }
 0x1b1   :  { %v2694_v10 = vmax.f32 %v908_v22, %v909_v18  ;;  %v768_v55 = vpop.f32.mrf.mxu0  ;;  %1235 = vmatprep.subr.mxu1 %v1005_v53  ;;  %v1044_v53 = vld [vmem:[#allocation7 + $0x360] sm:$0xff] }
 0x1b2   :  { %1236 = vmatpush1.msra.mxu1 %v1004_v15  ;;  %v886_v61 = vadd.f32 %v2675_v45, %v855_v5  ;;  %v1042_v5 = vld [vmem:[#allocation7 + $0x350] sm:$0xff] }
 0x1b3   :  { %v770_v8 = vpop.f32.mrf.mxu0  ;;  %1178 = vmatprep.mubr.f32.mxu1 %v2694_v10  ;;  %1387 = vmatmul.mubr.f32.vlgmr.msra.gmra.mxu0 %v2694_v10 }
 0x1b4   :  { %v856_v62 = vmax.f32 %v768_v55, %v770_v8  ;;  %1179 = vmatmul.mubr.f32.gmra.mxu1 %v2688_v37  ;;  %1392 = vmatprep.mubr.f32.mxu0 %v2272_v36  ;;  %v910_v60 = vmax.f32 %v886_v61, 0.0  ;;  %v1040_v8 = vld [vmem:[#allocation7 + $0x340] sm:$0xff]  ;;  %v1039_v61 = vld [vmem:[#allocation7 + $0x338] sm:$0xff] }
 0x1b5   :  { %1237 = vmatprep.subr.mxu1 %v1003_v56  ;;  %v1041_v56 = vld [vmem:[#allocation7 + $0x348] sm:$0xff] }
 0x1b6   :  { %v887_v57 = vadd.f32 %v2675_v45, %v856_v62  ;;  %1238 = vmatpush1.msra.mxu1 %v1002_v58 }
 0x1b7   :  { %1239 = vmatprep.subr.mxu1 %v1001_v3 }
 0x1b8   :  { %v911_v14 = vmax.f32 %v887_v57, 0.0  ;;  %v774_v16 = vpop.f32.mrf.mxu0  ;;  %1240 = vmatpush1.msra.mxu1 %v1000_v6  ;;  %v1038_v6 = vld [vmem:[#allocation7 + $0x330] sm:$0xff]  ;;  %v1037_v57 = vld [vmem:[#allocation7 + $0x328] sm:$0xff] }
 0x1b9   :  { %1241 = vmatprep.subr.mxu1 %v1063_v9 }
 0x1ba   :  { %v2702_v2 = vmax.f32 %v910_v60, %v911_v14  ;;  %v776_v17 = vpop.f32.mrf.mxu0  ;;  %1242 = vmatpush2.msra.mxu1 %v1062_v11  ;;  %v1036_v60 = vld [vmem:[#allocation7 + $0x320] sm:$0xff]  ;;  %v1035_v14 = vld [vmem:[#allocation7 + $0x318] sm:$0xff] }
 0x1bb   :  { %v857_v20 = vmax.f32 %v774_v16, %v776_v17  ;;  %1243 = vmatprep.subr.mxu1 %v1061_v19 }
 0x1bc   :  { %v780_v24 = vpop.f32.mrf.mxu0  ;;  %1184 = vmatprep.mubr.f32.mxu1 %v2702_v2  ;;  %1393 = vmatmul.mubr.f32.gmra.mxu0 %v2702_v2 }
 0x1bd   :  { %1185 = vmatmul.mubr.f32.gmra.mxu1 %v2694_v10  ;;  %1398 = vmatprep.mubr.f32.mxu0 %v2272_v36  ;;  %v888_v29 = vadd.f32 %v2675_v45, %v857_v20  ;;  %v1034_v20 = vld [vmem:[#allocation7 + $0x310] sm:$0xff] }
 0x1be   :  { %v782_v27 = vpop.f32.mrf.mxu0  ;;  %1244 = vmatpush2.msra.mxu1 %v1060_v23 }
 0x1bf   :  { %v858_v63 = vmax.f32 %v780_v24, %v782_v27  ;;  %1245 = vmatprep.subr.mxu1 %v1059_v25  ;;  %v912_v40 = vmax.f32 %v888_v29, 0.0  ;;  %v1032_v27 = vld [vmem:[#allocation7 + $0x300] sm:$0xff] }
 0x1c0   :  { %1246 = vmatpush2.msra.mxu1 %v1058_v26  ;;  %v1033_v26 = vld [vmem:[#allocation7 + $0x308] sm:$0xff] }
 0x1c1   :  { %v889_v31 = vadd.f32 %v2675_v45, %v858_v63  ;;  %v786_v13 = vpop.f32.mrf.mxu0  ;;  %1247 = vmatprep.subr.mxu1 %v1057_v28 }
 0x1c2   :  { %1248 = vmatpush2.msra.mxu1 %v1056_v30 }
 0x1c3   :  { %v913_v32 = vmax.f32 %v889_v31, 0.0  ;;  %v788_v33 = vpop.f32.mrf.mxu0  ;;  %1249 = vmatprep.subr.mxu1 %v1055_v59 }
 0x1c4   :  { %v859_v35 = vmax.f32 %v786_v13, %v788_v33  ;;  %1250 = vmatpush2.msra.mxu1 %v1054_v21 }
 0x1c5   :  { %v2710_v12 = vmax.f32 %v912_v40, %v913_v32  ;;  %v792_v39 = vpop.f32.mrf.mxu0  ;;  %1251 = vmatprep.subr.mxu1 %v1053_v7 }
 0x1c6   :  { %1252 = vmatpush2.msra.mxu1 %v1052_v34  ;;  %v890_v44 = vadd.f32 %v2675_v45, %v859_v35 }
 0x1c7   :  { %v794_v43 = vpop.f32.mrf.mxu0  ;;  %1190 = vmatprep.mubr.f32.mxu1 %v2710_v12  ;;  %1399 = vmatmul.mubr.f32.gmra.mxu0 %v2710_v12 }
 0x1c8   :  { %v860_v38 = vmax.f32 %v792_v39, %v794_v43  ;;  %1191 = vmatmul.mubr.f32.gmra.mxu1 %v2702_v2  ;;  %1253 = vmatprep.subr.mxu1 %v1051_v41  ;;  %v914_v49 = vmax.f32 %v890_v44, 0.0 }
 0x1c9   :  { %1254 = vmatpush2.msra.mxu1 %v1050_v42  ;;  %1404 = vmatprep.mubr.f32.mxu0 %v2272_v36 }
 0x1ca   :  { %v891_v46 = vadd.f32 %v2675_v45, %v860_v38  ;;  %1255 = vmatprep.subr.mxu1 %v1049_v0 }
 0x1cb   :  { %1256 = vmatpush2.msra.mxu1 %v1048_v50 }
 0x1cc   :  { %v915_v51 = vmax.f32 %v891_v46, 0.0  ;;  %v798_v52 = vpop.f32.mrf.mxu0  ;;  %1257 = vmatprep.subr.mxu1 %v1047_v4 }
 0x1cd   :  { %1258 = vmatpush2.msra.mxu1 %v1046_v47 }
 0x1ce   :  { %v2718_v22 = vmax.f32 %v914_v49, %v915_v51  ;;  %v800_v18 = vpop.f32.mrf.mxu0  ;;  %1259 = vmatprep.subr.mxu1 %v1045_v48  ;;  %v1501_v48 = vld [vmem:[#allocation8 + $0xf8] sm:$0xff]  ;;  %v1500_v49 = vld [vmem:[#allocation8 + $0xf0] sm:$0xff] }
 0x1cf   :  { %v861_v15 = vmax.f32 %v798_v52, %v800_v18  ;;  %1260 = vmatpush2.msra.mxu1 %v1044_v53  ;;  %v1484_v51 = vld [vmem:[#allocation8 + $0x70] sm:$0xff]  ;;  %v1499_v52 = vld [vmem:[#allocation8 + $0xe8] sm:$0xff]  ;;  %v1498_v53 = vld [vmem:[#allocation8 + $0xe0] sm:$0xff] }
 0x1d0   :  { %v804_v55 = vpop.f32.mrf.mxu0  ;;  %1196 = vmatprep.mubr.f32.mxu1 %v2718_v22  ;;  %1405 = vmatmul.mubr.f32.gmra.mxu0 %v2718_v22  ;;  %v1497_v18 = vld [vmem:[#allocation8 + $0xd8] sm:$0xff] }
 0x1d1   :  { %1197 = vmatmul.mubr.f32.gmra.mxu1 %v2710_v12  ;;  %1261 = vmatprep.subr.mxu1 %v1043_v54  ;;  %v892_v62 = vadd.f32 %v2675_v45, %v861_v15  ;;  %v1481_v54 = vld [vmem:[#allocation8 + $0x58] sm:$0xff]  ;;  %v1496_v15 = vld [vmem:[#allocation8 + $0xd0] sm:$0xff] }
 0x1d2   :  { %v806_v58 = vpop.f32.mrf.mxu0  ;;  %1262 = vmatpush2.msra.mxu1 %v1042_v5  ;;  %1410 = vmatprep.mubr.f32.mxu0 %v2272_v36  ;;  %v1480_v5 = vld [vmem:[#allocation8 + $0x50] sm:$0xff] }
 0x1d3   :  { %v862_v3 = vmax.f32 %v804_v55, %v806_v58  ;;  %1263 = vmatprep.subr.mxu1 %v1041_v56  ;;  %v916_v16 = vmax.f32 %v892_v62, 0.0  ;;  %v1495_v55 = vld [vmem:[#allocation8 + $0xc8] sm:$0xff]  ;;  %v1478_v58 = vld [vmem:[#allocation8 + $0x40] sm:$0xff]  ;;  %v1493_v62 = vld [vmem:[#allocation8 + $0xb8] sm:$0xff] }
 0x1d4   :  { %1264 = vmatpush2.msra.mxu1 %v1040_v8  ;;  %v1479_v56 = vld [vmem:[#allocation8 + $0x48] sm:$0xff]  ;;  %v1494_v8 = vld [vmem:[#allocation8 + $0xc0] sm:$0xff] }
 0x1d5   :  { %v893_v9 = vadd.f32 %v2675_v45, %v862_v3  ;;  %v810_v11 = vpop.f32.mrf.mxu0  ;;  %1265 = vmatprep.subr.mxu1 %v1039_v61  ;;  %v1533_v61 = vld [vmem:[#allocation8 + $0x1f8] sm:$0xff] }
 0x1d6   :  { %1266 = vmatpush2.msra.mxu1 %v1038_v6  ;;  %1858 = vmatprep.subr.mxu0 %v1533_v61  ;;  %v1517_v3 = vld [vmem:[#allocation8 + $0x178] sm:$0xff] }
 0x1d7   :  { %v917_v19 = vmax.f32 %v893_v9, 0.0  ;;  %v812_v17 = vpop.f32.mrf.mxu0  ;;  %1267 = vmatprep.subr.mxu1 %v1037_v57  ;;  %v1477_v6 = vld [vmem:[#allocation8 + $0x38] sm:$0xff]  ;;  %1859 = vmatpush3.msra.mxu0 %v1517_v3  ;;  %v1532_v57 = vld [vmem:[#allocation8 + $0x1f0] sm:$0xff] }
 0x1d8   :  { %v863_v23 = vmax.f32 %v810_v11, %v812_v17  ;;  %1268 = vmatpush2.msra.mxu1 %v1036_v60  ;;  %v1492_v9 = vld [vmem:[#allocation8 + $0xb0] sm:$0xff]  ;;  %1860 = vmatprep.subr.mxu0 %v1532_v57  ;;  %v1475_v17 = vld [vmem:[#allocation8 + $0x28] sm:$0xff] }
 0x1d9   :  { %v932_v24 = vmax.f32 %v916_v16, %v917_v19  ;;  %v816_v25 = vpop.f32.mrf.mxu0  ;;  %1269 = vmatprep.subr.mxu1 %v1035_v14  ;;  %v1516_v11 = vld [vmem:[#allocation8 + $0x170] sm:$0xff]  ;;  %v1531_v14 = vld [vmem:[#allocation8 + $0x1e8] sm:$0xff] }
 0x1da   :  { %1270 = vmatpush2.msra.mxu1 %v1034_v20  ;;  %v894_v29 = vadd.f32 %v2675_v45, %v863_v23  ;;  %v1476_v60 = vld [vmem:[#allocation8 + $0x30] sm:$0xff]  ;;  %1861 = vmatpush3.msra.mxu0 %v1516_v11  ;;  %v1491_v16 = vld [vmem:[#allocation8 + $0xa8] sm:$0xff]  ;;  %v1530_v20 = vld [vmem:[#allocation8 + $0x1e0] sm:$0xff] }
 0x1db   :  { %v818_v28 = vpop.f32.mrf.mxu0  ;;  %1202 = vmatprep.mubr.f32.mxu1 %v932_v24  ;;  %1411 = vmatmul.mubr.f32.gmra.mxu0 %v932_v24  ;;  %v1515_v19 = vld [vmem:[#allocation8 + $0x168] sm:$0xff]  ;;  %v1490_v23 = vld [vmem:[#allocation8 + $0xa0] sm:$0xff] }
 0x1dc   :  { %v864_v63 = vmax.f32 %v816_v25, %v818_v28  ;;  %1203 = vmatmul.mubr.f32.gmra.mxu1 %v2718_v22  ;;  %1271 = vmatprep.subr.mxu1 %v1033_v26  ;;  %v918_v59 = vmax.f32 %v894_v29, 0.0  ;;  %v1474_v25 = vld [vmem:[#allocation8 + $0x20] sm:$0xff]  ;;  %v1529_v26 = vld [vmem:[#allocation8 + $0x1d8] sm:$0xff] }
 0x1dd   :  { %1273 = vmatprep.mubr.f32.mxu1 %v2688_v37  ;;  %1272 = vmatpush2.msra.mxu1 %v1032_v27  ;;  %v1489_v27 = vld [vmem:[#allocation8 + $0x98] sm:$0xff] }
 0x1de   :  { %v895_v30 = vadd.f32 %v2675_v45, %v864_v63  ;;  %1416 = vmatprep.mubr.f32.mxu0 %v2272_v36  ;;  %1823 = vmatprep.subr.mxu1 %v1501_v48  ;;  %v1513_v28 = vld [vmem:[#allocation8 + $0x158] sm:$0xff]  ;;  %v1528_v63 = vld [vmem:[#allocation8 + $0x1d0] sm:$0xff]  ;;  %v1502_v48 = vld [vmem:[#allocation8 + $0x100] sm:$0xff] }
 0x1df   :  { %1862 = vmatprep.subr.mxu0 %v1531_v14  ;;  %v1473_v29 = vld [vmem:[#allocation8 + $0x18] sm:$0xff] }
 0x1e0   :  { %v919_v31 = vmax.f32 %v895_v30, 0.0  ;;  %v822_v13 = vpop.f32.mrf.mxu0  ;;  %1274 = vmatmul.mubr.f32.vlgmr.msra.gmra.mxu1 %v2683_v1  ;;  %1863 = vmatpush3.msra.mxu0 %v1515_v19  ;;  %v1488_v30 = vld [vmem:[#allocation8 + $0x90] sm:$0xff] }
 0x1e1   :  { %1279 = vmatprep.mubr.f32.mxu1 %v2694_v10  ;;  %1864 = vmatprep.subr.mxu0 %v1530_v20 }
 0x1e2   :  { %v824_v21 = vpop.f32.mrf.mxu0  ;;  %v933_v7 = vmax.f32 %v918_v59, %v919_v31  ;;  %v1512_v59 = vld [vmem:[#allocation8 + $0x150] sm:$0xff] }
 0x1e3   :  { %v865_v40 = vmax.f32 %v822_v13, %v824_v21  ;;  %v1472_v31 = vld [vmem:[#allocation8 + $0x10] sm:$0xff]  ;;  %v1527_v13 = vld [vmem:[#allocation8 + $0x1c8] sm:$0xff] }
 0x1e4   :  { %v828_v32 = vpop.f32.mrf.mxu0  ;;  %1280 = vmatmul.mubr.f32.gmra.mxu1 %v2688_v37  ;;  %1417 = vmatmul.mubr.f32.gmra.mxu0 %v933_v7  ;;  %v1487_v21 = vld [vmem:[#allocation8 + $0x88] sm:$0xff] }
 0x1e5   :  { %1285 = vmatprep.mubr.f32.mxu1 %v2702_v2  ;;  %1422 = vmatprep.mubr.f32.mxu0 %v2272_v36  ;;  %v896_v34 = vadd.f32 %v2675_v45, %v865_v40  ;;  %v1471_v40 = vld [vmem:[#allocation8 + $0x8] sm:$0xff] }
 0x1e6   :  { %v830_v33 = vpop.f32.mrf.mxu0 }
 0x1e7   :  { %v866_v35 = vmax.f32 %v828_v32, %v830_v33  ;;  %v920_v41 = vmax.f32 %v896_v34, 0.0  ;;  %v1526_v32 = vld [vmem:[#allocation8 + $0x1c0] sm:$0xff] }
 0x1e8   :  { %1286 = vmatmul.mubr.f32.gmra.mxu1 %v2694_v10  ;;  %v1486_v33 = vld [vmem:[#allocation8 + $0x80] sm:$0xff] }
 0x1e9   :  { %v897_v1 = vadd.f32 %v2675_v45, %v866_v35  ;;  %1291 = vmatprep.mubr.f32.mxu1 %v2710_v12  ;;  %v834_v39 = vpop.f32.mrf.mxu0  ;;  %v1510_v34 = vld [vmem:[#allocation8 + $0x140] sm:$0xff] }
 0x1ea   :  { %v1470_v35 = vld [vmem:[#allocation8] sm:$0xff] }
 0x1eb   :  { %v921_v42 = vmax.f32 %v897_v1, 0.0  ;;  %v836_v43 = vpop.f32.mrf.mxu0  ;;  %v1525_v1 = vld [vmem:[#allocation8 + $0x1b8] sm:$0xff] }
 0x1ec   :  { %1292 = vmatmul.mubr.f32.gmra.mxu1 %v2702_v2  ;;  %v867_v37 = vmax.f32 %v834_v39, %v836_v43  ;;  %v1509_v39 = vld [vmem:[#allocation8 + $0x138] sm:$0xff]  ;;  %v1523_v43 = vld [vmem:[#allocation8 + $0x1a8] sm:$0xff] }
 0x1ed   :  { %1297 = vmatprep.mubr.f32.mxu1 %v2718_v22  ;;  %v934_v0 = vmax.f32 %v920_v41, %v921_v42  ;;  %v1524_v41 = vld [vmem:[#allocation8 + $0x1b0] sm:$0xff] }
 0x1ee   :  { %v840_v44 = vpop.f32.mrf.mxu0  ;;  %v898_v10 = vadd.f32 %v2675_v45, %v867_v37  ;;  %v1508_v42 = vld [vmem:[#allocation8 + $0x130] sm:$0xff]  ;;  %v1507_v37 = vld [vmem:[#allocation8 + $0x128] sm:$0xff] }
 0x1ef   :  { %1423 = vmatmul.mubr.f32.gmra.mxu0 %v934_v0 }
 0x1f0   :  { %v842_v38 = vpop.f32.mrf.mxu0  ;;  %1298 = vmatmul.mubr.f32.gmra.mxu1 %v2710_v12  ;;  %1428 = vmatprep.mubr.f32.mxu0 %v2272_v36  ;;  %v922_v2 = vmax.f32 %v898_v10, 0.0  ;;  %v1485_v12 = vld [vmem:[#allocation8 + $0x78] sm:$0xff] }
 0x1f1   :  { %v868_v50 = vmax.f32 %v840_v44, %v842_v38  ;;  %1303 = vmatprep.mubr.f32.mxu1 %v932_v24  ;;  %1824 = vmatpush3.msra.mxu1 %v1485_v12  ;;  %v1506_v44 = vld [vmem:[#allocation8 + $0x120] sm:$0xff]  ;;  %v1521_v38 = vld [vmem:[#allocation8 + $0x198] sm:$0xff] }
 0x1f2   :  { %1825 = vmatprep.subr.mxu1 %v1500_v49  ;;  %v1505_v10 = vld [vmem:[#allocation8 + $0x118] sm:$0xff] }
 0x1f3   :  { %v899_v4 = vadd.f32 %v2675_v45, %v868_v50  ;;  %1826 = vmatpush3.msra.mxu1 %v1484_v51  ;;  %v1483_v45 = vld [vmem:[#allocation8 + $0x68] sm:$0xff]  ;;  %v1520_v50 = vld [vmem:[#allocation8 + $0x190] sm:$0xff] }
 0x1f4   :  { %1304 = vmatmul.mubr.f32.gmra.mxu1 %v2718_v22  ;;  %1827 = vmatprep.subr.mxu1 %v1499_v52  ;;  %v1482_v22 = vld [vmem:[#allocation8 + $0x60] sm:$0xff] }
 0x1f5   :  { %v923_v46 = vmax.f32 %v899_v4, 0.0  ;;  %1309 = vmatprep.mubr.f32.mxu1 %v933_v7  ;;  %1828 = vmatpush3.msra.mxu1 %v1483_v45  ;;  %v1504_v4 = vld [vmem:[#allocation8 + $0x110] sm:$0xff] }
 0x1f6   :  { %1829 = vmatprep.subr.mxu1 %v1498_v53 }
 0x1f7   :  { %v935_v47 = vmax.f32 %v922_v2, %v923_v46  ;;  %1830 = vmatpush3.msra.mxu1 %v1482_v22  ;;  %v1519_v2 = vld [vmem:[#allocation8 + $0x188] sm:$0xff] }
 0x1f8   :  { %1310 = vmatmul.mubr.f32.gmra.mxu1 %v932_v24  ;;  %1831 = vmatprep.subr.mxu1 %v1497_v18  ;;  %v1514_v24 = vld [vmem:[#allocation8 + $0x160] sm:$0xff]  ;;  %v1503_v46 = vld [vmem:[#allocation8 + $0x108] sm:$0xff] }
 0x1f9   :  { %1315 = vmatprep.mubr.f32.mxu1 %v934_v0  ;;  %1429 = vmatmul.mubr.f32.gmra.mxu0 %v935_v47  ;;  %v1522_v0 = vld [vmem:[#allocation8 + $0x1a0] sm:$0xff] }
 0x1fa   :  { %1832 = vmatpush3.msra.mxu1 %v1481_v54  ;;  %1865 = vmatpush3.msra.mxu0 %v1514_v24  ;;  %v1518_v47 = vld [vmem:[#allocation8 + $0x180] sm:$0xff] }
 0x1fb   :  { %1833 = vmatprep.subr.mxu1 %v1496_v15  ;;  %1866 = vmatprep.subr.mxu0 %v1529_v26 }
 0x1fc   :  { %1316 = vmatmul.mubr.f32.gmra.mxu1 %v933_v7  ;;  %1867 = vmatpush3.msra.mxu0 %v1513_v28  ;;  %v1511_v7 = vld [vmem:[#allocation8 + $0x148] sm:$0xff] }
 0x1fd   :  { %1834 = vmatpush3.msra.mxu1 %v1480_v5  ;;  %1868 = vmatprep.subr.mxu0 %v1528_v63 }
 0x1fe   :  { %1835 = vmatprep.subr.mxu1 %v1495_v55  ;;  %1869 = vmatpush3.msra.mxu0 %v1512_v59 }
 0x1ff   :  { %1836 = vmatpush3.msra.mxu1 %v1479_v56  ;;  %1870 = vmatprep.subr.mxu0 %v1527_v13 }
 0x200   :  { %1837 = vmatprep.subr.mxu1 %v1494_v8  ;;  %1871 = vmatpush3.msra.mxu0 %v1511_v7 }
 0x201   :  { %1838 = vmatpush3.msra.mxu1 %v1478_v58  ;;  %1872 = vmatprep.subr.mxu0 %v1526_v32 }
 0x202   :  { %1839 = vmatprep.subr.mxu1 %v1493_v62  ;;  %1873 = vmatpush3.msra.mxu0 %v1510_v34 }
 0x203   :  { %1840 = vmatpush3.msra.mxu1 %v1477_v6  ;;  %1874 = vmatprep.subr.mxu0 %v1525_v1 }
 0x204   :  { %1841 = vmatprep.subr.mxu1 %v1492_v9  ;;  %1875 = vmatpush3.msra.mxu0 %v1509_v39 }
 0x205   :  { %1842 = vmatpush3.msra.mxu1 %v1476_v60  ;;  %1876 = vmatprep.subr.mxu0 %v1524_v41 }
 0x206   :  { %1843 = vmatprep.subr.mxu1 %v1491_v16  ;;  %1877 = vmatpush3.msra.mxu0 %v1508_v42 }
 0x207   :  { %1844 = vmatpush3.msra.mxu1 %v1475_v17  ;;  %1878 = vmatprep.subr.mxu0 %v1523_v43 }
 0x208   :  { %1845 = vmatprep.subr.mxu1 %v1490_v23  ;;  %1879 = vmatpush3.msra.mxu0 %v1507_v37 }
 0x209   :  { %1846 = vmatpush3.msra.mxu1 %v1474_v25  ;;  %1880 = vmatprep.subr.mxu0 %v1522_v0  ;;  %v1820_v0 = vld [vmem:[%s2792_s4] ss:$0 sm:$0xff] }
 0x20a   :  { %1847 = vmatprep.subr.mxu1 %v1489_v27  ;;  %1881 = vmatpush3.msra.mxu0 %v1506_v44 }
 0x20b   :  { %1848 = vmatpush3.msra.mxu1 %v1473_v29  ;;  %1882 = vmatprep.subr.mxu0 %v1521_v38 }
 0x20c   :  { %1849 = vmatprep.subr.mxu1 %v1488_v30  ;;  %1883 = vmatpush3.msra.mxu0 %v1505_v10 }
 0x20d   :  { %1850 = vmatpush3.msra.mxu1 %v1472_v31  ;;  %1884 = vmatprep.subr.mxu0 %v1520_v50 }
 0x20e   :  { %1851 = vmatprep.subr.mxu1 %v1487_v21  ;;  %1885 = vmatpush3.msra.mxu0 %v1504_v4 }
 0x20f   :  { %1852 = vmatpush3.msra.mxu1 %v1471_v40  ;;  %1886 = vmatprep.subr.mxu0 %v1519_v2 }
 0x210   :  { %1853 = vmatprep.subr.mxu1 %v1486_v33  ;;  %1887 = vmatpush3.msra.mxu0 %v1503_v46 }
 0x211   :  { %1854 = vmatpush3.msra.mxu1 %v1470_v35  ;;  %1888 = vmatprep.subr.mxu0 %v1518_v47 }
 0x212   :  { %1910 = vmatprep.subr.mxu1 %v2272_v36  ;;  %1889 = vmatpush3.msra.mxu0 %v1502_v48 }
 0x255   :  { %v1162_v12 = vpop.f32.mrf.mxu1 }
 0x257   :  { %v1164_v49 = vpop.f32.mrf.mxu1 }
 0x260   :  { %v1168_v51 = vpop.f32.mrf.mxu1 }
 0x262   :  { %v1170_v52 = vpop.f32.mrf.mxu1 }
 0x269   :  { %v1174_v45 = vpop.f32.mrf.mxu1 }
 0x26b   :  { %v1176_v53 = vpop.f32.mrf.mxu1 }
 0x273   :  { %v1388_v55 = vpop.f32.mrf.mxu0 }
 0x274   :  { %v1180_v22 = vpop.f32.mrf.mxu1 }
 0x275   :  { %v1390_v8 = vpop.f32.mrf.mxu0 }
 0x276   :  { %v1182_v18 = vpop.f32.mrf.mxu1 }
 0x27c   :  { %v1394_v61 = vpop.f32.mrf.mxu0 }
 0x27d   :  { %v2748_v54 = vpop.f32.mrf.mxu1 }
 0x27e   :  { %v1396_v3 = vpop.f32.mrf.mxu0 }
 0x27f   :  { %v1188_v15 = vpop.f32.mrf.mxu1 }
 0x287   :  { %v1400_v57 = vpop.f32.mrf.mxu0 }
 0x288   :  { %v1192_v5 = vpop.f32.mrf.mxu1 }
 0x289   :  { %v1402_v60 = vpop.f32.mrf.mxu0 }
 0x28a   :  { %v1194_v56 = vpop.f32.mrf.mxu1 }
 0x290   :  { %v1406_v16 = vpop.f32.mrf.mxu0 }
 0x291   :  { %v1198_v58 = vpop.f32.mrf.mxu1 }
 0x292   :  { %v1408_v23 = vpop.f32.mrf.mxu0 }
 0x293   :  { %v2750_v62 = vpop.f32.mrf.mxu1 }
 0x29b   :  { %v1412_v28 = vpop.f32.mrf.mxu0 }
 0x29c   :  { %v2752_v6 = vpop.f32.mrf.mxu1 }
 0x29d   :  { %v1414_v33 = vpop.f32.mrf.mxu0 }
 0x29e   :  { %v2754_v9 = vpop.f32.mrf.mxu1 }
 0x2a0   :  { %v1275_v11 = vpop.f32.mrf.mxu1 }
 0x2a1   :  { %v1276_v29 = vadd.f32 %v1275_v11, %v1162_v12 }
 0x2a2   :  { %v1277_v14 = vpop.f32.mrf.mxu1 }
 0x2a3   :  { %v1278_v24 = vadd.f32 %v1277_v14, %v1164_v49  ;;  %v1389_v34 = vadd.f32 %v1388_v55, %v1276_v29 }
 0x2a4   :  { %v1281_v19 = vpop.f32.mrf.mxu1  ;;  %v1418_v43 = vpop.f32.mrf.mxu0 }
 0x2a5   :  { %v1282_v25 = vadd.f32 %v1281_v19, %v1168_v51  ;;  %v1391_v31 = vadd.f32 %v1390_v8, %v1278_v24 }
 0x2a6   :  { %v1283_v17 = vpop.f32.mrf.mxu1  ;;  %v1420_v47 = vpop.f32.mrf.mxu0 }
 0x2a7   :  { %v1284_v20 = vadd.f32 %v1283_v17, %v1170_v52  ;;  %v1395_v13 = vadd.f32 %v1394_v61, %v1282_v25  ;;  %v1435_v42 = vmax.f32 %v1389_v34, %v1391_v31  ;;  %v1697_v17 = vld [vmem:[#allocation10 + $0x78] sm:$0xff] }
 0x2a8   :  { %v1287_v26 = vpop.f32.mrf.mxu1 }
 0x2a9   :  { %v1288_v27 = vadd.f32 %v1287_v26, %v1174_v45  ;;  %v1397_v63 = vadd.f32 %v1396_v3, %v1284_v20  ;;  %v1450_v46 = vadd.f32 %v1820_v0, %v1435_v42  ;;  %v1693_v42 = vld [vmem:[#allocation10 + $0x58] sm:$0xff] }
 0x2aa   :  { %v1289_v30 = vpop.f32.mrf.mxu1 }
 0x2ab   :  { %v1290_v59 = vadd.f32 %v1289_v30, %v1176_v53  ;;  %v1401_v7 = vadd.f32 %v1400_v57, %v1288_v27  ;;  %v1436_v35 = vmax.f32 %v1395_v13, %v1397_v63  ;;  %v1695_v63 = vld [vmem:[#allocation10 + $0x68] sm:$0xff] }
 0x2ac   :  { %v1293_v21 = vpop.f32.mrf.mxu1 }
 0x2ad   :  { %v1403_v40 = vadd.f32 %v1402_v60, %v1290_v59  ;;  %v1294_v32 = vadd.f32 %v1293_v21, %v1180_v22  ;;  %v1451_v10 = vadd.f32 %v1820_v0, %v1436_v35 }
 0x2ae   :  { %v1295_v1 = vpop.f32.mrf.mxu1 }
 0x2af   :  { %v1437_v39 = vmax.f32 %v1401_v7, %v1403_v40  ;;  %v1296_v41 = vadd.f32 %v1295_v1, %v1182_v18  ;;  %v1407_v44 = vadd.f32 %v1406_v16, %v1294_v32  ;;  %v1459_v49 = vmax.f32 %v1451_v10, 0.0  ;;  %v1424_v51 = vpop.f32.mrf.mxu0  ;;  %v1687_v10 = vld [vmem:[#allocation10 + $0x28] sm:$0xff] }
 0x2b0   :  { %v1299_v37 = vpop.f32.mrf.mxu1  ;;  %v1458_v18 = vmax.f32 %v1450_v46, 0.0  ;;  %v1683_v46 = vld [vmem:[#allocation10 + $0x8] sm:$0xff] }
 0x2b1   :  { %v1409_v38 = vadd.f32 %v1408_v23, %v1296_v41  ;;  %v1452_v2 = vadd.f32 %v1820_v0, %v1437_v39  ;;  %v1300_v60 = vadd.f32 %v1299_v37, %v2748_v54  ;;  %v1426_v14 = vpop.f32.mrf.mxu0  ;;  %v1694_v41 = vld [vmem:[#allocation10 + $0x60] sm:$0xff]  ;;  %v1691_v37 = vld [vmem:[#allocation10 + $0x48] sm:$0xff] }
 0x2b2   :  { %v1301_v50 = vpop.f32.mrf.mxu1  ;;  %v1466_v11 = vmax.f32 %v1458_v18, %v1459_v49 }
 0x2b3   :  { %v1438_v4 = vmax.f32 %v1407_v44, %v1409_v38  ;;  %v1460_v53 = vmax.f32 %v1452_v2, 0.0  ;;  %v1302_v55 = vadd.f32 %v1301_v50, %v1188_v15  ;;  %v1696_v15 = vld [vmem:[#allocation10 + $0x70] sm:$0xff]  ;;  %v1413_v27 = vadd.f32 %v1412_v28, %v1300_v60  ;;  %v1689_v44 = vld [vmem:[#allocation10 + $0x38] sm:$0xff]  ;;  %v1686_v50 = vld [vmem:[#allocation10 + $0x20] sm:$0xff] }
 0x2b4   :  { %v1305_v48 = vpop.f32.mrf.mxu1  ;;  %v1688_v38 = vld [vmem:[#allocation10 + $0x30] sm:$0xff] }
 0x2b5   :  { %v1453_v12 = vadd.f32 %v1820_v0, %v1438_v4  ;;  %v1306_v8 = vadd.f32 %v1305_v48, %v1192_v5  ;;  %v1415_v23 = vadd.f32 %v1414_v33, %v1302_v55  ;;  %v1685_v4 = vld [vmem:[#allocation10 + $0x18] sm:$0xff]  ;;  %v1684_v2 = vld [vmem:[#allocation10 + $0x10] sm:$0xff] }
 0x2b6   :  { %v1307_v52 = vpop.f32.mrf.mxu1 }
 0x2b7   :  { %v1308_v45 = vadd.f32 %v1307_v52, %v1194_v56  ;;  %v1461_v22 = vmax.f32 %v1453_v12, 0.0  ;;  %v1419_v56 = vadd.f32 %v1418_v43, %v1306_v8  ;;  %v1439_v59 = vmax.f32 %v1413_v27, %v1415_v23  ;;  %v1692_v43 = vld [vmem:[#allocation10 + $0x50] sm:$0xff]  ;;  %v1822_v8 = vld [vmem:[%s2796_s8] ss:$0 sm:$0xff] }
 0x2b8   :  { %v1311_v61 = vpop.f32.mrf.mxu1 }
 0x2b9   :  { %v1312_v3 = vadd.f32 %v1311_v61, %v1198_v58  ;;  %v1467_v57 = vmax.f32 %v1460_v53, %v1461_v22  ;;  %v1421_v16 = vadd.f32 %v1420_v47, %v1308_v45  ;;  %v1430_v24 = vpop.f32.mrf.mxu0  ;;  %v1454_v40 = vadd.f32 %v1820_v0, %v1439_v59  ;;  %v1682_v47 = vld [vmem:[#allocation10] sm:$0xff] }
 0x2ba   :  { %v1313_v19 = vpop.f32.mrf.mxu1 }
 0x2bb   :  { %v1314_v20 = vadd.f32 %v1313_v19, %v2750_v62  ;;  %1605 = vmatprep.mubr.f32.mxu1 %v1467_v57  ;;  %v1425_v5 = vadd.f32 %v1424_v51, %v1312_v3  ;;  %v1440_v54 = vmax.f32 %v1419_v56, %v1421_v16  ;;  %v1432_v31 = vpop.f32.mrf.mxu0  ;;  %v1462_v1 = vmax.f32 %v1454_v40, 0.0  ;;  %v1821_v51 = vld [vmem:[%s2794_s6] ss:$0 sm:$0xff] }
 0x2bc   :  { %v1317_v25 = vpop.f32.mrf.mxu1  ;;  %1606 = vmatmul.mubr.f32.vlgmr.msra.gmra.mxu1 %v1466_v11 }
 0x2bd   :  { %v1427_v26 = vadd.f32 %v1426_v14, %v1314_v20  ;;  %v1318_v58 = vadd.f32 %v1317_v25, %v2752_v6  ;;  %1911 = vmatpush3.msra.mxu1 %v1697_v17  ;;  %v1455_v7 = vadd.f32 %v1820_v0, %v1440_v54  ;;  %1942 = vmatprep.mubr.msk.f32.mxu1 %vm2273_vm6, %v2272_v36 }
 0x2be   :  { %v1319_v29 = vpop.f32.mrf.mxu1  ;;  %1912 = vmatprep.subr.mxu1 %v2272_v36 }
 0x2bf   :  { %v1441_v30 = vmax.f32 %v1425_v5, %v1427_v26  ;;  %v1320_v62 = vadd.f32 %v1319_v29, %v2754_v9  ;;  %1913 = vmatpush3.msra.mxu1 %v1696_v15  ;;  %v1431_v13 = vadd.f32 %v1430_v24, %v1318_v58  ;;  %v1463_v33 = vmax.f32 %v1455_v7, 0.0 }
 0x2c0   :  { %1914 = vmatprep.subr.mxu1 %v2272_v36 }
 0x2c1   :  { %v1433_v21 = vadd.f32 %v1432_v31, %v1320_v62  ;;  %1915 = vmatpush3.msra.mxu1 %v1695_v63  ;;  %v1456_v28 = vadd.f32 %v1820_v0, %v1441_v30  ;;  %v1468_v39 = vmax.f32 %v1462_v1, %v1463_v33 }
 0x2c2   :  { %1916 = vmatprep.subr.mxu1 %v2272_v36 }
 0x2c3   :  { %v1442_v6 = vmax.f32 %v1431_v13, %v1433_v21  ;;  %v1464_v34 = vmax.f32 %v1456_v28, 0.0  ;;  %1917 = vmatpush3.msra.mxu1 %v1694_v41 }
 0x2c4   :  { %1918 = vmatprep.subr.mxu1 %v2272_v36 }
 0x2c5   :  { %v1457_v32 = vadd.f32 %v1820_v0, %v1442_v6  ;;  %1919 = vmatpush3.msra.mxu1 %v1693_v42  ;;  %v1690_v0 = vld [vmem:[#allocation10 + $0x40] sm:$0xff] }
 0x2c6   :  { %1920 = vmatprep.subr.mxu1 %v2272_v36 }
 0x2c7   :  { %v1465_v35 = vmax.f32 %v1457_v32, 0.0  ;;  %1921 = vmatpush3.msra.mxu1 %v1692_v43 }
 0x2c8   :  { %1922 = vmatprep.subr.mxu1 %v2272_v36 }
 0x2c9   :  { %v1469_v9 = vmax.f32 %v1464_v34, %v1465_v35  ;;  %1923 = vmatpush3.msra.mxu1 %v1691_v37 }
 0x2ca   :  { %1924 = vmatprep.subr.mxu1 %v2272_v36 }
 0x2cb   :  { %1675 = vmatprep.mubr.f32.mxu0 %v1469_v9  ;;  %1925 = vmatpush3.msra.mxu1 %v1690_v0 }
 0x2cc   :  { %1676 = vmatmul.mubr.f32.vlgmr.msra.gmra.mxu0 %v1468_v39  ;;  %1926 = vmatprep.subr.mxu1 %v2272_v36 }
 0x2cd   :  { %1927 = vmatpush3.msra.mxu1 %v1689_v44 }
 0x2ce   :  { %1928 = vmatprep.subr.mxu1 %v2272_v36 }
 0x2cf   :  { %1929 = vmatpush3.msra.mxu1 %v1688_v38 }
 0x2d0   :  { %1930 = vmatprep.subr.mxu1 %v2272_v36 }
 0x2d1   :  { %1931 = vmatpush3.msra.mxu1 %v1687_v10 }
 0x2d2   :  { %1932 = vmatprep.subr.mxu1 %v2272_v36 }
 0x2d3   :  { %1933 = vmatpush3.msra.mxu1 %v1686_v50 }
 0x2d4   :  { %1934 = vmatprep.subr.mxu1 %v2272_v36 }
 0x2d5   :  { %1935 = vmatpush3.msra.mxu1 %v1685_v4 }
 0x2d6   :  { %1936 = vmatprep.subr.mxu1 %v2272_v36 }
 0x2d7   :  { %1937 = vmatpush3.msra.mxu1 %v1684_v2 }
 0x2d8   :  { %1938 = vmatprep.subr.mxu1 %v2272_v36 }
 0x2d9   :  { %1939 = vmatpush3.msra.mxu1 %v1683_v46 }
 0x2da   :  { %1940 = vmatprep.subr.mxu1 %v2272_v36 }
 0x2db   :  { %1941 = vmatpush3.msra.mxu1 %v1682_v47 }
 0x37c   :  { %v1855_v48 = vpop.f32.mrf.mxu1 }
 0x37e   :  { %v1856_v12 = vpop.f32.mrf.mxu1 }
 0x37f   :  { %v1857_v49 = vadd.f32 %v1856_v12, %v1855_v48 }
 0x381   :  { %v1608_v53 = vadd.f32 %v1857_v49, %v1821_v51 }
 0x38c   :  { %v1890_v52 = vpop.f32.mrf.mxu0 }
 0x38e   :  { %v1891_v45 = vpop.f32.mrf.mxu0 }
 0x38f   :  { %v1892_v22 = vadd.f32 %v1891_v45, %v1890_v52 }
 0x391   :  { %v1678_v18 = vadd.f32 %v1892_v22, %v1608_v53 }
 0x393   :  { %v1681_v55 = vmax.f32 %v1678_v18, 0.0 }
 0x395   :  { %1943 = vmatmul.mubr.f32.vlgmr.msra.gmra.mxu1 %v1681_v55 }
 0x455   :  { %v1771_v36 = vpop.f32.mrf.mxu1 }
 0x456   :  { %v1772_v61 = vadd.f32 %v1822_v8, %v1771_v36 }
 0x457   :  { %v1944_v3 = vpop.f32.mrf.mxu1 }
 0x458   :  { %1775 = vst [vmem:[#allocation11] sm:$0xff] %v1772_v61 }
 0x459   :  { %2242 = shalt.err (!%p2239_p1)
}
 0x45a   :  { %1785 = dma.vmem_to_hbm [thread:$0]  %s1783_s23, 128, %s2797_s9, [#allocation4]  }
 0x45b   :  { %2257 = dma.done.wait [#allocation4], 128  }
 0x45c   :  { %2258 = vsyncadd [#allocation4], 4294967168 }
 0x45d   :  { %1789 = vsyncpa [#allocation3], 1 }
 0x45e   :  { %1790 = vsyncpa [#allocation6], 1 }
 0x45f   :  { %1791 = vsyncpa [#allocation9], 1 }
 0x460   :  { %1792 = vsyncpa [#allocation4], 1 }

</bundles_post_ra>
